<compile_context>
chip_gen: v7x
topology: tpu7x:2x2x1
jax: 0.10.0
libtpu: 0.0.40
codegen_flags: <defaults>
</compile_context>

<pallas_src>
import functools

import jax
import jax.numpy as jnp
import numpy as np
from jax.experimental import pallas as pl
from jax.experimental.pallas import tpu as pltpu

EPS = 1e-5  # nn.BatchNorm2d default


# ------------------------------ Pallas kernel ------------------------------- #

def _bn_scale_shift(c, gamma, beta, inv_n):
    """Training-mode BatchNorm folded to y = c*scale + shift.

    One-pass moments: a single lane reduction over the stacked [c; c*c] block,
    var = E[x^2] - mean^2 (biased, like PyTorch's normalization), f32 accumulation.
    """
    ch = c.shape[0]
    m = jnp.sum(jnp.concatenate([c, c * c], axis=0), axis=1, keepdims=True) * inv_n
    mu = m[:ch]
    var = jnp.maximum(m[ch:] - mu * mu, 0.0)
    scale = gamma * jax.lax.rsqrt(var + EPS)
    shift = beta - mu * scale
    return scale, shift


def _make_segmenter_kernel(P1, with_features):
    """P1 = N*16*16 layer-1 output pixels; pixels live on the lane dimension."""
    inv_p1 = 1.0 / P1
    inv_p2 = 1.0 / (4 * P1)

    def kernel(a1_ref, w1_ref, g1_ref, be1_ref,
               w2_ref, g2_ref, be2_ref,
               w3_ref, b3_ref,
               out_ref, *feat_refs):
        # ---- layer 1: ConvT(48,32,4,1) as one GEMM (transposed) + BN(train) + ReLU ----
        c1 = jnp.dot(w1_ref[...], a1_ref[...],
                     preferred_element_type=jnp.float32)            # [32, P1] f32
        s1, t1 = _bn_scale_shift(c1, g1_ref[...], be1_ref[...], inv_p1)
        h1 = jnp.maximum(c1 * s1 + t1, 0.0)                         # [32, P1] f32
        h1b = h1.astype(jnp.bfloat16)

        # ---- layer 2: ConvT(32,16,2,2): 4 per-tap channel GEMMs, lane-concatenated ----
        # Computed as a local value (no ref round trip); BN over all 4*P1 columns.
        c2 = jnp.concatenate(
            [jnp.dot(w2_ref[t], h1b, preferred_element_type=jnp.float32)
             for t in range(4)], axis=1)                            # [16, 4*P1] f32
        s2, t2 = _bn_scale_shift(c2, g2_ref[...], be2_ref[...], inv_p2)
        h2 = jnp.maximum(c2 * s2 + t2, 0.0)                         # [16, 4*P1] f32

        # ---- layer 3: ConvT(16,nc,2,2): one GEMM, all 4 taps in the rows, + bias ----
        out_ref[...] = (jnp.dot(w3_ref[...], h2.astype(jnp.bfloat16),
                                preferred_element_type=jnp.float32)
                        + b3_ref[...])                              # [nc*4, 4*P1]

        if with_features:
            h2_ref, h1_ref = feat_refs
            h2_ref[...] = h2                                        # fl6 (transposed)
            h1_ref[...] = h1                                        # fl3 (transposed)

    return kernel


def _full_spec(shape):
    """Whole-array block; single-buffered (grid=(1,) has nothing to pipeline)."""
    ndim = len(shape)
    idx = lambda i, _n=ndim: (0,) * _n
    try:
        return pl.BlockSpec(shape, idx, pipeline_mode=pl.Buffered(1))
    except Exception:  # pipeline_mode / Buffered unavailable -> default double-buffering
        return pl.BlockSpec(shape, idx)


def _fused_forward(a1t, w1m, g1, be1, w2m, g2, be2, w3m, b3m, nc, return_features):
    _, P1 = a1t.shape
    args = (a1t, w1m, g1, be1, w2m, g2, be2, w3m, b3m)

    if return_features:
        out_shape = (
            jax.ShapeDtypeStruct((nc * 4, 4 * P1), jnp.float32),  # conv3 rows (co,kh,kw)
            jax.ShapeDtypeStruct((16, 4 * P1), jnp.float32),      # fl6, transposed layout
            jax.ShapeDtypeStruct((32, P1), jnp.float32),          # fl3, transposed layout
        )
        out_specs = tuple(_full_spec(s.shape) for s in out_shape)
        out_list = out_shape
    else:
        out_shape = jax.ShapeDtypeStruct((nc * 4, 4 * P1), jnp.float32)
        out_specs = _full_spec(out_shape.shape)
        out_list = (out_shape,)

    # N-aware VMEM limit: operands + results (+ headroom for live f32 intermediates),
    # capped at 64 MiB so it is also valid on v7x (64 MiB physical VMEM).
    op_bytes = sum(int(np.prod(a.shape)) * np.dtype(a.dtype).itemsize for a in args)
    op_bytes += sum(int(np.prod(s.shape)) * np.dtype(s.dtype).itemsize for s in out_list)
    vmem_limit = int(min(max(4 * op_bytes + (8 << 20), 32 << 20), 64 << 20))

    return pl.pallas_call(
        _make_segmenter_kernel(P1, return_features),
        out_shape=out_shape,
        grid=(1,),
        in_specs=[_full_spec(a.shape) for a in args],
        out_specs=out_specs,
        compiler_params=pltpu.CompilerParams(
            dimension_semantics=("arbitrary",),
            vmem_limit_bytes=vmem_limit),
    )(*args)


# ------------------------------ wrapper (JAX) -------------------------------- #

@functools.partial(jax.jit, static_argnames=("num_classes", "return_all_features"))
def segmenter_forward(x, params, num_classes, return_all_features=False):
    N = x.shape[0]
    P1 = N * 16 * 16
    nc = num_classes

    # Layer-1 im2col, built directly in transposed (K, pixels) layout, in bf16.
    # rows = (ci, kh, kw); cols = (n, oh, ow). ConvT(k=4, s=1) == Conv(flipped W) on a
    # 3-padded input.  Pure layout glue (XLA fuses it); see TODO(synk) in the header.
    xb = x.astype(jnp.bfloat16)
    xp = jnp.pad(xb, ((0, 0), (0, 0), (3, 3), (3, 3)))
    taps = [xp[:, :, kh:kh + 16, kw:kw + 16] for kh in range(4) for kw in range(4)]
    p = jnp.stack(taps, axis=2)                                  # [N, 48, 16, 16, 16]
    a1t = p.transpose(1, 2, 0, 3, 4).reshape(48 * 16, P1)        # [768, P1]

    # weights -> GEMM layouts (bf16 MXU operands; BN params / bias stay f32)
    W1, W2, W3 = params["W1"], params["W2"], params["W3"]
    w1m = (W1[:, :, ::-1, ::-1].transpose(1, 0, 2, 3)
           .reshape(32, 48 * 16)).astype(jnp.bfloat16)           # [co, (ci,kh,kw)]
    w2m = W2.transpose(2, 3, 1, 0).reshape(4, 16, 32).astype(jnp.bfloat16)   # [tap, co, ci]
    w3m = W3.transpose(1, 2, 3, 0).reshape(nc * 4, 16).astype(jnp.bfloat16)  # [(co,kh,kw), ci]
    b3m = jnp.repeat(params["b3"], 4)[:, None].astype(jnp.float32)           # [nc*4, 1]
    g1 = params["gamma1"][:, None].astype(jnp.float32)
    be1 = params["beta1"][:, None].astype(jnp.float32)
    g2 = params["gamma2"][:, None].astype(jnp.float32)
    be2 = params["beta2"][:, None].astype(jnp.float32)
    # NOTE: conv biases b1/b2 are intentionally dropped: training-mode BN subtracts the
    # batch mean, so any per-channel constant added by the conv cancels exactly.

    if return_all_features:
        out_rows, h2, h1 = _fused_forward(a1t, w1m, g1, be1, w2m, g2, be2,
                                          w3m, b3m, nc, True)
    else:
        out_rows = _fused_forward(a1t, w1m, g1, be1, w2m, g2, be2,
                                  w3m, b3m, nc, False)

    # out_rows rows = (co, kh2, kw2); cols = (kh1, kw1, n, h1, w1)
    # output pixel: h = 4*h1 + 2*kh1 + kh2,  w = 4*w1 + 2*kw1 + kw2
    out = (out_rows.reshape(nc, 2, 2, 2, 2, N, 16, 16)
           .transpose(5, 0, 6, 3, 1, 7, 4, 2)        # (n, co, h1, kh1, kh2, w1, kw1, kw2)
           .reshape(N, nc, 64, 64))

    if return_all_features:
        fl6 = (h2.reshape(16, 2, 2, N, 16, 16)       # (c, kh1, kw1, n, h1, w1)
               .transpose(3, 0, 4, 1, 5, 2)          # (n, c, h1, kh1, w1, kw1)
               .reshape(N, 16, 32, 32))
        fl3 = h1.reshape(32, N, 16, 16).transpose(1, 0, 2, 3)   # [N, 32, 16, 16]
        return out, fl6.reshape(-1), fl3.reshape(-1)
    return out


# --------------------------- pure-JAX reference ------------------------------ #

def _conv_transpose_ref(x, W, b, stride):
    N, Cin, H, Wd = x.shape
    _, Cout, kh, kw = W.shape
    Ho, Wo = (H - 1) * stride + kh, (Wd - 1) * stride + kw
    out = jnp.zeros((N, Cout, Ho, Wo), jnp.float32)
    for i in range(kh):
        for j in range(kw):
            upd = jnp.einsum('nchw,cd->ndhw', x, W[:, :, i, j])
            out = out.at[:, :, i:i + (H - 1) * stride + 1:stride,
                             j:j + (Wd - 1) * stride + 1:stride].add(upd)
    return out + b[None, :, None, None]


def _bn_relu_ref(x, gamma, beta):
    mu = jnp.mean(x, axis=(0, 2, 3), keepdims=True)
    var = jnp.mean((x - mu) ** 2, axis=(0, 2, 3), keepdims=True)
    y = (gamma[None, :, None, None] * (x - mu) * jax.lax.rsqrt(var + EPS)
         + beta[None, :, None, None])
    return jnp.maximum(y, 0.0)


def segmenter_ref(x, params):
    fl3 = _bn_relu_ref(_conv_transpose_ref(x, params["W1"], params["b1"], 1),
                       params["gamma1"], params["beta1"])
    fl6 = _bn_relu_ref(_conv_transpose_ref(fl3, params["W2"], params["b2"], 2),
                       params["gamma2"], params["beta2"])
    out = _conv_transpose_ref(fl6, params["W3"], params["b3"], 2)
    return out, fl6, fl3


# ----------------------------------- main ------------------------------------ #

if __name__ == "__main__":
    num_classes = 5
    key = jax.random.PRNGKey(0)
    ks = jax.random.split(key, 11)
    params = {
        "W1": 0.05 * jax.random.normal(ks[0], (48, 32, 4, 4), jnp.float32),
        "b1": 0.05 * jax.random.normal(ks[1], (32,), jnp.float32),
        "gamma1": 1.0 + 0.1 * jax.random.normal(ks[2], (32,), jnp.float32),
        "beta1": 0.1 * jax.random.normal(ks[3], (32,), jnp.float32),
        "W2": 0.1 * jax.random.normal(ks[4], (32, 16, 2, 2), jnp.float32),
        "b2": 0.05 * jax.random.normal(ks[5], (16,), jnp.float32),
        "gamma2": 1.0 + 0.1 * jax.random.normal(ks[6], (16,), jnp.float32),
        "beta2": 0.1 * jax.random.normal(ks[7], (16,), jnp.float32),
        "W3": 0.1 * jax.random.normal(ks[8], (16, num_classes, 2, 2), jnp.float32),
        "b3": 0.05 * jax.random.normal(ks[9], (num_classes,), jnp.float32),
    }
    # module docstring: input is [N, 48, 13, 13]; use N = 2
    x = jax.random.normal(ks[10], (2, 48, 13, 13), jnp.float32)

    out = segmenter_forward(x, params, num_classes=num_classes)
    out = jax.block_until_ready(out)
    assert out.shape == (2, num_classes, 64, 64)

    ref_out, ref_fl6, ref_fl3 = segmenter_ref(x, params)
    ref_out = jax.block_until_ready(ref_out)
    np.testing.assert_allclose(np.asarray(out), np.asarray(ref_out), rtol=5e-2, atol=5e-2)

    # also exercise the return_all_features path (feature outputs only exist here)
    out2, fl6_flat, fl3_flat = segmenter_forward(x, params, num_classes=num_classes,
                                                 return_all_features=True)
    jax.block_until_ready((out2, fl6_flat, fl3_flat))
    np.testing.assert_allclose(np.asarray(out2), np.asarray(ref_out), rtol=5e-2, atol=5e-2)
    np.testing.assert_allclose(np.asarray(fl6_flat), np.asarray(ref_fl6).reshape(-1),
                               rtol=5e-2, atol=5e-2)
    np.testing.assert_allclose(np.asarray(fl3_flat), np.asarray(ref_fl3).reshape(-1),
                               rtol=5e-2, atol=5e-2)

    print("KERNEL_OK")
</pallas_src>

<mosaic_0001>
module attributes {stable_mosaic.version = 11 : i64} {
  func.func @kernel(%arg0: i32, %arg1: memref<768x512xbf16, #tpu.memory_space<vmem>>, %arg2: memref<32x768xbf16, #tpu.memory_space<vmem>>, %arg3: memref<32x1xf32, #tpu.memory_space<vmem>>, %arg4: memref<32x1xf32, #tpu.memory_space<vmem>>, %arg5: memref<4x16x32xbf16, #tpu.memory_space<vmem>>, %arg6: memref<16x1xf32, #tpu.memory_space<vmem>>, %arg7: memref<16x1xf32, #tpu.memory_space<vmem>>, %arg8: memref<20x16xbf16, #tpu.memory_space<vmem>>, %arg9: memref<20x1xf32, #tpu.memory_space<vmem>>, %arg10: memref<20x2048xf32, #tpu.memory_space<vmem>>) attributes {dimension_semantics = [#tpu.dimension_semantics<arbitrary>], iteration_bounds = array<i64: 1>, scalar_prefetch = 0 : i64, scratch_operands = 0 : i64, tpu.core_type = #tpu.core_type<tc>, window_params = [{pipeline_mode = #tpu.pipeline_mode<synchronous>, transform_indices = @transform_0, window_bounds = array<i64: 768, 512>}, {pipeline_mode = #tpu.pipeline_mode<synchronous>, transform_indices = @transform_1, window_bounds = array<i64: 32, 768>}, {pipeline_mode = #tpu.pipeline_mode<synchronous>, transform_indices = @transform_2, window_bounds = array<i64: 32, 1>}, {pipeline_mode = #tpu.pipeline_mode<synchronous>, transform_indices = @transform_3, window_bounds = array<i64: 32, 1>}, {pipeline_mode = #tpu.pipeline_mode<synchronous>, transform_indices = @transform_4, window_bounds = array<i64: 4, 16, 32>}, {pipeline_mode = #tpu.pipeline_mode<synchronous>, transform_indices = @transform_5, window_bounds = array<i64: 16, 1>}, {pipeline_mode = #tpu.pipeline_mode<synchronous>, transform_indices = @transform_6, window_bounds = array<i64: 16, 1>}, {pipeline_mode = #tpu.pipeline_mode<synchronous>, transform_indices = @transform_7, window_bounds = array<i64: 20, 16>}, {pipeline_mode = #tpu.pipeline_mode<synchronous>, transform_indices = @transform_8, window_bounds = array<i64: 20, 1>}, {pipeline_mode = #tpu.pipeline_mode<synchronous>, transform_indices = @transform_9, window_bounds = array<i64: 20, 2048>}]} {
    %c0 = arith.constant 0 : index
    %c0_0 = arith.constant 0 : index
    %0 = vector.load %arg2[%c0, %c0_0] : memref<32x768xbf16, #tpu.memory_space<vmem>>, vector<32x768xbf16>
    %c0_1 = arith.constant 0 : index
    %c0_2 = arith.constant 0 : index
    %1 = vector.load %arg1[%c0_1, %c0_2] : memref<768x512xbf16, #tpu.memory_space<vmem>>, vector<768x512xbf16>
    %cst = arith.constant dense<0.000000e+00> : vector<32x512xf32>
    %2 = tpu.matmul %0, %1, %cst {dimension_numbers = #tpu.dot_dimension_numbers<[1], [0], [0], [1], [0, 0, 1, 1], [], []>} : vector<32x768xbf16>, vector<768x512xbf16>, vector<32x512xf32> -> vector<32x512xf32>
    %c0_3 = arith.constant 0 : index
    %c0_4 = arith.constant 0 : index
    %3 = vector.load %arg3[%c0_3, %c0_4] : memref<32x1xf32, #tpu.memory_space<vmem>>, vector<32x1xf32>
    %c0_5 = arith.constant 0 : index
    %c0_6 = arith.constant 0 : index
    %4 = vector.load %arg4[%c0_5, %c0_6] : memref<32x1xf32, #tpu.memory_space<vmem>>, vector<32x1xf32>
    %5 = arith.mulf %2, %2 : vector<32x512xf32>
    %6 = tpu.concatenate %2, %5 in 0 : vector<32x512xf32>, vector<32x512xf32> -> vector<64x512xf32>
    %cst_7 = arith.constant dense<0.000000e+00> : vector<64xf32>
    %7 = vector.multi_reduction <add>, %6, %cst_7 [1] : vector<64x512xf32> to vector<64xf32>
    %8 = vector.shape_cast %7 : vector<64xf32> to vector<64x1xf32>
    %cst_8 = arith.constant 0.001953125 : f32
    %9 = vector.broadcast %cst_8 : f32 to vector<64x1xf32>
    %10 = arith.mulf %8, %9 : vector<64x1xf32>
    %11 = vector.extract_strided_slice %10 {offsets = [0, 0], sizes = [32, 1], strides = [1, 1]} : vector<64x1xf32> to vector<32x1xf32>
    %12 = vector.extract_strided_slice %10 {offsets = [32, 0], sizes = [32, 1], strides = [1, 1]} : vector<64x1xf32> to vector<32x1xf32>
    %13 = arith.mulf %11, %11 : vector<32x1xf32>
    %14 = arith.subf %12, %13 : vector<32x1xf32>
    %cst_9 = arith.constant 0.000000e+00 : f32
    %15 = vector.broadcast %cst_9 : f32 to vector<32x1xf32>
    %16 = arith.maximumf %14, %15 : vector<32x1xf32>
    %cst_10 = arith.constant 9.99999974E-6 : f32
    %17 = vector.broadcast %cst_10 : f32 to vector<32x1xf32>
    %18 = arith.addf %16, %17 : vector<32x1xf32>
    %19 = math.rsqrt %18 : vector<32x1xf32>
    %20 = arith.mulf %3, %19 : vector<32x1xf32>
    %21 = arith.mulf %11, %20 : vector<32x1xf32>
    %22 = arith.subf %4, %21 : vector<32x1xf32>
    %23 = vector.broadcast %20 : vector<32x1xf32> to vector<32x512xf32>
    %24 = arith.mulf %2, %23 : vector<32x512xf32>
    %25 = vector.broadcast %22 : vector<32x1xf32> to vector<32x512xf32>
    %26 = arith.addf %24, %25 : vector<32x512xf32>
    %cst_11 = arith.constant 0.000000e+00 : f32
    %27 = vector.broadcast %cst_11 : f32 to vector<32x512xf32>
    %28 = arith.maximumf %26, %27 : vector<32x512xf32>
    %29 = arith.truncf %28 : vector<32x512xf32> to vector<32x512xbf16>
    %c0_12 = arith.constant 0 : index
    %c0_13 = arith.constant 0 : index
    %c0_14 = arith.constant 0 : index
    %30 = vector.load %arg5[%c0_12, %c0_13, %c0_14] : memref<4x16x32xbf16, #tpu.memory_space<vmem>>, vector<1x16x32xbf16>
    %31 = vector.shape_cast %30 : vector<1x16x32xbf16> to vector<16x32xbf16>
    %cst_15 = arith.constant dense<0.000000e+00> : vector<16x512xf32>
    %32 = tpu.matmul %31, %29, %cst_15 {dimension_numbers = #tpu.dot_dimension_numbers<[1], [0], [0], [1], [0, 0, 1, 1], [], []>} : vector<16x32xbf16>, vector<32x512xbf16>, vector<16x512xf32> -> vector<16x512xf32>
    %c1 = arith.constant 1 : index
    %c0_16 = arith.constant 0 : index
    %c0_17 = arith.constant 0 : index
    %33 = vector.load %arg5[%c1, %c0_16, %c0_17] : memref<4x16x32xbf16, #tpu.memory_space<vmem>>, vector<1x16x32xbf16>
    %34 = vector.shape_cast %33 : vector<1x16x32xbf16> to vector<16x32xbf16>
    %cst_18 = arith.constant dense<0.000000e+00> : vector<16x512xf32>
    %35 = tpu.matmul %34, %29, %cst_18 {dimension_numbers = #tpu.dot_dimension_numbers<[1], [0], [0], [1], [0, 0, 1, 1], [], []>} : vector<16x32xbf16>, vector<32x512xbf16>, vector<16x512xf32> -> vector<16x512xf32>
    %c2 = arith.constant 2 : index
    %c0_19 = arith.constant 0 : index
    %c0_20 = arith.constant 0 : index
    %36 = vector.load %arg5[%c2, %c0_19, %c0_20] : memref<4x16x32xbf16, #tpu.memory_space<vmem>>, vector<1x16x32xbf16>
    %37 = vector.shape_cast %36 : vector<1x16x32xbf16> to vector<16x32xbf16>
    %cst_21 = arith.constant dense<0.000000e+00> : vector<16x512xf32>
    %38 = tpu.matmul %37, %29, %cst_21 {dimension_numbers = #tpu.dot_dimension_numbers<[1], [0], [0], [1], [0, 0, 1, 1], [], []>} : vector<16x32xbf16>, vector<32x512xbf16>, vector<16x512xf32> -> vector<16x512xf32>
    %c3 = arith.constant 3 : index
    %c0_22 = arith.constant 0 : index
    %c0_23 = arith.constant 0 : index
    %39 = vector.load %arg5[%c3, %c0_22, %c0_23] : memref<4x16x32xbf16, #tpu.memory_space<vmem>>, vector<1x16x32xbf16>
    %40 = vector.shape_cast %39 : vector<1x16x32xbf16> to vector<16x32xbf16>
    %cst_24 = arith.constant dense<0.000000e+00> : vector<16x512xf32>
    %41 = tpu.matmul %40, %29, %cst_24 {dimension_numbers = #tpu.dot_dimension_numbers<[1], [0], [0], [1], [0, 0, 1, 1], [], []>} : vector<16x32xbf16>, vector<32x512xbf16>, vector<16x512xf32> -> vector<16x512xf32>
    %42 = tpu.concatenate %32, %35, %38, %41 in 1 : vector<16x512xf32>, vector<16x512xf32>, vector<16x512xf32>, vector<16x512xf32> -> vector<16x2048xf32>
    %c0_25 = arith.constant 0 : index
    %c0_26 = arith.constant 0 : index
    %43 = vector.load %arg6[%c0_25, %c0_26] : memref<16x1xf32, #tpu.memory_space<vmem>>, vector<16x1xf32>
    %c0_27 = arith.constant 0 : index
    %c0_28 = arith.constant 0 : index
    %44 = vector.load %arg7[%c0_27, %c0_28] : memref<16x1xf32, #tpu.memory_space<vmem>>, vector<16x1xf32>
    %45 = arith.mulf %42, %42 : vector<16x2048xf32>
    %46 = tpu.concatenate %42, %45 in 0 : vector<16x2048xf32>, vector<16x2048xf32> -> vector<32x2048xf32>
    %cst_29 = arith.constant dense<0.000000e+00> : vector<32xf32>
    %47 = vector.multi_reduction <add>, %46, %cst_29 [1] : vector<32x2048xf32> to vector<32xf32>
    %48 = vector.shape_cast %47 : vector<32xf32> to vector<32x1xf32>
    %cst_30 = arith.constant 4.8828125E-4 : f32
    %49 = vector.broadcast %cst_30 : f32 to vector<32x1xf32>
    %50 = arith.mulf %48, %49 : vector<32x1xf32>
    %51 = vector.extract_strided_slice %50 {offsets = [0, 0], sizes = [16, 1], strides = [1, 1]} : vector<32x1xf32> to vector<16x1xf32>
    %52 = vector.extract_strided_slice %50 {offsets = [16, 0], sizes = [16, 1], strides = [1, 1]} : vector<32x1xf32> to vector<16x1xf32>
    %53 = arith.mulf %51, %51 : vector<16x1xf32>
    %54 = arith.subf %52, %53 : vector<16x1xf32>
    %cst_31 = arith.constant 0.000000e+00 : f32
    %55 = vector.broadcast %cst_31 : f32 to vector<16x1xf32>
    %56 = arith.maximumf %54, %55 : vector<16x1xf32>
    %cst_32 = arith.constant 9.99999974E-6 : f32
    %57 = vector.broadcast %cst_32 : f32 to vector<16x1xf32>
    %58 = arith.addf %56, %57 : vector<16x1xf32>
    %59 = math.rsqrt %58 : vector<16x1xf32>
    %60 = arith.mulf %43, %59 : vector<16x1xf32>
    %61 = arith.mulf %51, %60 : vector<16x1xf32>
    %62 = arith.subf %44, %61 : vector<16x1xf32>
    %63 = vector.broadcast %60 : vector<16x1xf32> to vector<16x2048xf32>
    %64 = arith.mulf %42, %63 : vector<16x2048xf32>
    %65 = vector.broadcast %62 : vector<16x1xf32> to vector<16x2048xf32>
    %66 = arith.addf %64, %65 : vector<16x2048xf32>
    %cst_33 = arith.constant 0.000000e+00 : f32
    %67 = vector.broadcast %cst_33 : f32 to vector<16x2048xf32>
    %68 = arith.maximumf %66, %67 : vector<16x2048xf32>
    %c0_34 = arith.constant 0 : index
    %c0_35 = arith.constant 0 : index
    %69 = vector.load %arg8[%c0_34, %c0_35] : memref<20x16xbf16, #tpu.memory_space<vmem>>, vector<20x16xbf16>
    %70 = arith.truncf %68 : vector<16x2048xf32> to vector<16x2048xbf16>
    %cst_36 = arith.constant dense<0.000000e+00> : vector<20x2048xf32>
    %71 = tpu.matmul %69, %70, %cst_36 {dimension_numbers = #tpu.dot_dimension_numbers<[1], [0], [0], [1], [0, 0, 1, 1], [], []>} : vector<20x16xbf16>, vector<16x2048xbf16>, vector<20x2048xf32> -> vector<20x2048xf32>
    %c0_37 = arith.constant 0 : index
    %c0_38 = arith.constant 0 : index
    %72 = vector.load %arg9[%c0_37, %c0_38] : memref<20x1xf32, #tpu.memory_space<vmem>>, vector<20x1xf32>
    %73 = vector.broadcast %72 : vector<20x1xf32> to vector<20x2048xf32>
    %74 = arith.addf %71, %73 : vector<20x2048xf32>
    %c0_39 = arith.constant 0 : index
    %c0_40 = arith.constant 0 : index
    %75 = vector.load %arg10[%c0_39, %c0_40] : memref<20x2048xf32, #tpu.memory_space<vmem>>, vector<20x2048xf32>
    tpu.vector_store %arg10[%c0_39, %c0_40], %74 {strides = array<i32>} : memref<20x2048xf32, #tpu.memory_space<vmem>>, vector<20x2048xf32>,
    return
  }
  func.func @transform_0(%arg0: i32) -> (i32, i32) {
    %c0_i32 = arith.constant 0 : i32
    %c0_i32_0 = arith.constant 0 : i32
    %c0_i32_1 = arith.constant 0 : i32
    return %c0_i32, %c0_i32_0 : i32, i32
  }
  func.func @transform_1(%arg0: i32) -> (i32, i32) {
    %c0_i32 = arith.constant 0 : i32
    %c0_i32_0 = arith.constant 0 : i32
    %c0_i32_1 = arith.constant 0 : i32
    return %c0_i32, %c0_i32_0 : i32, i32
  }
  func.func @transform_2(%arg0: i32) -> (i32, i32) {
    %c0_i32 = arith.constant 0 : i32
    %c0_i32_0 = arith.constant 0 : i32
    %c0_i32_1 = arith.constant 0 : i32
    return %c0_i32, %c0_i32_0 : i32, i32
  }
  func.func @transform_3(%arg0: i32) -> (i32, i32) {
    %c0_i32 = arith.constant 0 : i32
    %c0_i32_0 = arith.constant 0 : i32
    %c0_i32_1 = arith.constant 0 : i32
    return %c0_i32, %c0_i32_0 : i32, i32
  }
  func.func @transform_4(%arg0: i32) -> (i32, i32, i32) {
    %c0_i32 = arith.constant 0 : i32
    %c0_i32_0 = arith.constant 0 : i32
    %c0_i32_1 = arith.constant 0 : i32
    %c0_i32_2 = arith.constant 0 : i32
    return %c0_i32, %c0_i32_0, %c0_i32_1 : i32, i32, i32
  }
  func.func @transform_5(%arg0: i32) -> (i32, i32) {
    %c0_i32 = arith.constant 0 : i32
    %c0_i32_0 = arith.constant 0 : i32
    %c0_i32_1 = arith.constant 0 : i32
    return %c0_i32, %c0_i32_0 : i32, i32
  }
  func.func @transform_6(%arg0: i32) -> (i32, i32) {
    %c0_i32 = arith.constant 0 : i32
    %c0_i32_0 = arith.constant 0 : i32
    %c0_i32_1 = arith.constant 0 : i32
    return %c0_i32, %c0_i32_0 : i32, i32
  }
  func.func @transform_7(%arg0: i32) -> (i32, i32) {
    %c0_i32 = arith.constant 0 : i32
    %c0_i32_0 = arith.constant 0 : i32
    %c0_i32_1 = arith.constant 0 : i32
    return %c0_i32, %c0_i32_0 : i32, i32
  }
  func.func @transform_8(%arg0: i32) -> (i32, i32) {
    %c0_i32 = arith.constant 0 : i32
    %c0_i32_0 = arith.constant 0 : i32
    %c0_i32_1 = arith.constant 0 : i32
    return %c0_i32, %c0_i32_0 : i32, i32
  }
  func.func @transform_9(%arg0: i32) -> (i32, i32) {
    %c0_i32 = arith.constant 0 : i32
    %c0_i32_0 = arith.constant 0 : i32
    %c0_i32_1 = arith.constant 0 : i32
    return %c0_i32, %c0_i32_0 : i32, i32
  }
}

</mosaic_0001>

<bundles_post_ra>
// kernel: segmenter_forward.1
= control target key start
LH: loop header
LB: loop body
LE: loop exit
PB: predicated region body
PF: predicated region fallthrough
CT: control target
= control target key end

     0   :  { %vm1782_vm0 = vcmask 261120   ;;  %vm2448_vm1 = vcmask 130048   ;;  %s4892_s0 = inlined_call_operand.vmem [shape: bf16[768,512], index: 0, kind: input, shape index: {}]   ;;  %s4893_s1 = inlined_call_operand.vmem [shape: bf16[32,768], index: 1, kind: input, shape index: {}]   ;;  %s4894_s2 = inlined_call_operand.vmem [shape: f32[32,1], index: 2, kind: input, shape index: {}]   ;;  %s4895_s3 = inlined_call_operand.vmem [shape: f32[32,1], index: 3, kind: input, shape index: {}]   ;;  %s4896_s4 = inlined_call_operand.vmem [shape: bf16[4,16,32], index: 4, kind: input, shape index: {}]   ;;  %s4897_s5 = inlined_call_operand.vmem [shape: f32[16,1], index: 5, kind: input, shape index: {}]   ;;  %s4898_s6 = inlined_call_operand.vmem [shape: f32[16,1], index: 6, kind: input, shape index: {}]   ;;  %s4899_s8 = inlined_call_operand.vmem [shape: f32[20,1], index: 8, kind: input, shape index: {}]   ;;  %s4900_s7 = inlined_call_operand.vmem [shape: bf16[20,16], index: 7, kind: input, shape index: {}]   ;;  %s4901_s9 = inlined_call_operand.vmem [shape: f32[20,2048], index: 9, kind: output, shape index: {}]  }
   0x1   :  { %v3190_v0 = vld [vmem:[%s4892_s0 + $0x4] ss:$16 sps:$4 sm:$0xff]   ;;  %v3192_v1 = vld [vmem:[%s4892_s0 + $0xc] ss:$16 sps:$4 sm:$0xff]   ;;  %v3194_v2 = vld [vmem:[%s4892_s0] ss:$16 sps:$4 sm:$0xff]  }
   0x2   :  { %1257 = vmatprep.subr.bf16.mxu0 %v3190_v0  ;;  %v3195_v3 = vld [vmem:[%s4892_s0 + $0x8] ss:$16 sps:$4 sm:$0xff]   ;;  %1416 = vmatprep.subr.bf16.mxu1 %v3192_v1  ;;  %v3196_v4 = vld [vmem:[%s4892_s0 + $0x24] ss:$16 sps:$4 sm:$0xff]   ;;  %v3198_v5 = vld [vmem:[%s4892_s0 + $0x2c] ss:$16 sps:$4 sm:$0xff]  }
   0x3   :  { %1258 = vmatpush1.bf16.msra.mxu0 %v3194_v2  ;;  %1417 = vmatpush1.bf16.msra.mxu1 %v3195_v3  ;;  %v3200_v6 = vld [vmem:[%s4892_s0 + $0x20] ss:$16 sps:$4 sm:$0xff]   ;;  %v3201_v7 = vld [vmem:[%s4892_s0 + $0x28] ss:$16 sps:$4 sm:$0xff]   ;;  %v3202_v8 = vld [vmem:[%s4892_s0 + $0x44] ss:$16 sps:$4 sm:$0xff]  }
   0x4   :  { %1259 = vmatprep.subr.bf16.mxu0 %v3196_v4  ;;  %1418 = vmatprep.subr.bf16.mxu1 %v3198_v5  ;;  %v3204_v9 = vld [vmem:[%s4892_s0 + $0x4c] ss:$16 sps:$4 sm:$0xff]   ;;  %v3206_v10 = vld [vmem:[%s4892_s0 + $0x40] ss:$16 sps:$4 sm:$0xff]   ;;  %v3207_v11 = vld [vmem:[%s4892_s0 + $0x48] ss:$16 sps:$4 sm:$0xff]  }
   0x5   :  { %v3208_v12 = vld [vmem:[%s4892_s0 + $0x64] ss:$16 sps:$4 sm:$0xff]   ;;  %v3210_v13 = vld [vmem:[%s4892_s0 + $0x6c] ss:$16 sps:$4 sm:$0xff]   ;;  %v3212_v14 = vld [vmem:[%s4892_s0 + $0x60] ss:$16 sps:$4 sm:$0xff]  }
   0x6   :  { %v3213_v15 = vld [vmem:[%s4892_s0 + $0x68] ss:$16 sps:$4 sm:$0xff]   ;;  %v3214_v16 = vld [vmem:[%s4892_s0 + $0x84] ss:$16 sps:$4 sm:$0xff]   ;;  %v3216_v17 = vld [vmem:[%s4892_s0 + $0x8c] ss:$16 sps:$4 sm:$0xff]  }
   0x7   :  { %1260 = vmatpush1.bf16.msra.mxu0 %v3200_v6  ;;  %1419 = vmatpush1.bf16.msra.mxu1 %v3201_v7  ;;  %v3218_v18 = vld [vmem:[%s4892_s0 + $0x80] ss:$16 sps:$4 sm:$0xff]   ;;  %v3219_v19 = vld [vmem:[%s4892_s0 + $0x88] ss:$16 sps:$4 sm:$0xff]   ;;  %v3220_v20 = vld [vmem:[%s4892_s0 + $0xa4] ss:$16 sps:$4 sm:$0xff]  }
   0x8   :  { %1261 = vmatprep.subr.bf16.mxu0 %v3202_v8  ;;  %1420 = vmatprep.subr.bf16.mxu1 %v3204_v9  ;;  %v3222_v21 = vld [vmem:[%s4892_s0 + $0xac] ss:$16 sps:$4 sm:$0xff]   ;;  %v3224_v22 = vld [vmem:[%s4892_s0 + $0xa0] ss:$16 sps:$4 sm:$0xff]   ;;  %v3225_v23 = vld [vmem:[%s4892_s0 + $0xa8] ss:$16 sps:$4 sm:$0xff]  }
   0x9   :  { %v3226_v24 = vld [vmem:[%s4892_s0 + $0xc4] ss:$16 sps:$4 sm:$0xff]   ;;  %v3228_v25 = vld [vmem:[%s4892_s0 + $0xcc] ss:$16 sps:$4 sm:$0xff]   ;;  %v3230_v26 = vld [vmem:[%s4892_s0 + $0xc0] ss:$16 sps:$4 sm:$0xff]  }
   0xa   :  { %v3231_v27 = vld [vmem:[%s4892_s0 + $0xc8] ss:$16 sps:$4 sm:$0xff]   ;;  %v3232_v28 = vld [vmem:[%s4892_s0 + $0xe4] ss:$16 sps:$4 sm:$0xff]   ;;  %v3234_v29 = vld [vmem:[%s4892_s0 + $0xec] ss:$16 sps:$4 sm:$0xff]  }
   0xb   :  { %1262 = vmatpush1.bf16.msra.mxu0 %v3206_v10  ;;  %1421 = vmatpush1.bf16.msra.mxu1 %v3207_v11  ;;  %v3236_v30 = vld [vmem:[%s4892_s0 + $0xe0] ss:$16 sps:$4 sm:$0xff]   ;;  %v3237_v31 = vld [vmem:[%s4892_s0 + $0xe8] ss:$16 sps:$4 sm:$0xff]   ;;  %v3238_v32 = vld [vmem:[%s4892_s0 + $0x104] ss:$16 sps:$4 sm:$0xff]  }
   0xc   :  { %1263 = vmatprep.subr.bf16.mxu0 %v3208_v12  ;;  %1422 = vmatprep.subr.bf16.mxu1 %v3210_v13  ;;  %v3240_v33 = vld [vmem:[%s4892_s0 + $0x10c] ss:$16 sps:$4 sm:$0xff]   ;;  %v3242_v34 = vld [vmem:[%s4892_s0 + $0x100] ss:$16 sps:$4 sm:$0xff]   ;;  %v3243_v35 = vld [vmem:[%s4892_s0 + $0x108] ss:$16 sps:$4 sm:$0xff]  }
   0xd   :  { %v3244_v36 = vld [vmem:[%s4892_s0 + $0x124] ss:$16 sps:$4 sm:$0xff]   ;;  %v3246_v37 = vld [vmem:[%s4892_s0 + $0x12c] ss:$16 sps:$4 sm:$0xff]   ;;  %v3248_v38 = vld [vmem:[%s4892_s0 + $0x120] ss:$16 sps:$4 sm:$0xff]  }
   0xe   :  { %v3249_v39 = vld [vmem:[%s4892_s0 + $0x128] ss:$16 sps:$4 sm:$0xff]   ;;  %v3250_v40 = vld [vmem:[%s4892_s0 + $0x144] ss:$16 sps:$4 sm:$0xff]   ;;  %v3252_v41 = vld [vmem:[%s4892_s0 + $0x14c] ss:$16 sps:$4 sm:$0xff]  }
   0xf   :  { %1264 = vmatpush1.bf16.msra.mxu0 %v3212_v14  ;;  %1423 = vmatpush1.bf16.msra.mxu1 %v3213_v15  ;;  %v3254_v42 = vld [vmem:[%s4892_s0 + $0x140] ss:$16 sps:$4 sm:$0xff]   ;;  %v3255_v43 = vld [vmem:[%s4892_s0 + $0x148] ss:$16 sps:$4 sm:$0xff]   ;;  %v3256_v44 = vld [vmem:[%s4892_s0 + $0x164] ss:$16 sps:$4 sm:$0xff]  }
  0x10   :  { %1265 = vmatprep.subr.bf16.mxu0 %v3214_v16  ;;  %1424 = vmatprep.subr.bf16.mxu1 %v3216_v17  ;;  %v3258_v45 = vld [vmem:[%s4892_s0 + $0x16c] ss:$16 sps:$4 sm:$0xff]   ;;  %v3260_v46 = vld [vmem:[%s4892_s0 + $0x160] ss:$16 sps:$4 sm:$0xff]   ;;  %v3261_v47 = vld [vmem:[%s4892_s0 + $0x168] ss:$16 sps:$4 sm:$0xff]  }
  0x11   :  { %v3288_v48 = vld [vmem:[%s4893_s1 + $0x4] ss:$24 sps:$4 sm:$0xff]   ;;  %v3266_v51 = vld [vmem:[%s4892_s0 + $0x180] ss:$16 sps:$4 sm:$0xff]   ;;  %v3267_v52 = vld [vmem:[%s4892_s0 + $0x188] ss:$16 sps:$4 sm:$0xff]  }
  0x12   :  { %v3262_v49 = vld [vmem:[%s4892_s0 + $0x184] ss:$16 sps:$4 sm:$0xff]   ;;  %v3264_v50 = vld [vmem:[%s4892_s0 + $0x18c] ss:$16 sps:$4 sm:$0xff]   ;;  %1289 = vmatprep.mubr.bf16.mxu0 %v3288_v48  ;;  %1448 = vmatprep.mubr.bf16.mxu1 %v3288_v48  ;;  %v3272_v55 = vld [vmem:[%s4892_s0 + $0x1a0] ss:$16 sps:$4 sm:$0xff]  }
  0x13   :  { %1266 = vmatpush1.bf16.msra.mxu0 %v3218_v18  ;;  %1425 = vmatpush1.bf16.msra.mxu1 %v3219_v19  ;;  %v3268_v53 = vld [vmem:[%s4892_s0 + $0x1a4] ss:$16 sps:$4 sm:$0xff]   ;;  %v3270_v54 = vld [vmem:[%s4892_s0 + $0x1ac] ss:$16 sps:$4 sm:$0xff]   ;;  %v3273_v56 = vld [vmem:[%s4892_s0 + $0x1a8] ss:$16 sps:$4 sm:$0xff]  }
  0x14   :  { %1267 = vmatprep.subr.bf16.mxu0 %v3220_v20  ;;  %1426 = vmatprep.subr.bf16.mxu1 %v3222_v21  ;;  %v3274_v57 = vld [vmem:[%s4892_s0 + $0x1c4] ss:$16 sps:$4 sm:$0xff]   ;;  %v3276_v58 = vld [vmem:[%s4892_s0 + $0x1cc] ss:$16 sps:$4 sm:$0xff]   ;;  %v3278_v59 = vld [vmem:[%s4892_s0 + $0x1c0] ss:$16 sps:$4 sm:$0xff]  }
  0x15   :  { %v3279_v60 = vld [vmem:[%s4892_s0 + $0x1c8] ss:$16 sps:$4 sm:$0xff]   ;;  %v3280_v61 = vld [vmem:[%s4892_s0 + $0x1e4] ss:$16 sps:$4 sm:$0xff]   ;;  %v3282_v62 = vld [vmem:[%s4892_s0 + $0x1ec] ss:$16 sps:$4 sm:$0xff]  }
  0x16   :  { %v3284_v63 = vld [vmem:[%s4892_s0 + $0x1e0] ss:$16 sps:$4 sm:$0xff]   ;;  %v3285_v0 = vld [vmem:[%s4892_s0 + $0x1e8] ss:$16 sps:$4 sm:$0xff]   ;;  %v3291_v1 = vld [vmem:[%s4892_s0 + $0x204] ss:$16 sps:$4 sm:$0xff]  }
  0x17   :  { %1268 = vmatpush1.bf16.msra.mxu0 %v3224_v22  ;;  %1427 = vmatpush1.bf16.msra.mxu1 %v3225_v23  ;;  %v3294_v2 = vld [vmem:[%s4892_s0 + $0x20c] ss:$16 sps:$4 sm:$0xff]   ;;  %v3286_v3 = vld [vmem:[%s4893_s1] ss:$24 sps:$4 sm:$0xff]   ;;  %v3297_v6 = vld [vmem:[%s4892_s0 + $0x224] ss:$16 sps:$4 sm:$0xff]  }
  0x18   :  { %1269 = vmatprep.subr.bf16.mxu0 %v3226_v24  ;;  %1428 = vmatprep.subr.bf16.mxu1 %v3228_v25  ;;  %v3289_v4 = vld [vmem:[%s4892_s0 + $0x200] ss:$16 sps:$4 sm:$0xff]   ;;  %v3292_v5 = vld [vmem:[%s4892_s0 + $0x208] ss:$16 sps:$4 sm:$0xff]   ;;  %v3300_v7 = vld [vmem:[%s4892_s0 + $0x22c] ss:$16 sps:$4 sm:$0xff]  }
  0x19   :  { %v3295_v8 = vld [vmem:[%s4892_s0 + $0x220] ss:$16 sps:$4 sm:$0xff]   ;;  %v3298_v9 = vld [vmem:[%s4892_s0 + $0x228] ss:$16 sps:$4 sm:$0xff]   ;;  %v3303_v10 = vld [vmem:[%s4892_s0 + $0x244] ss:$16 sps:$4 sm:$0xff]  }
  0x1a   :  { %v3306_v11 = vld [vmem:[%s4892_s0 + $0x24c] ss:$16 sps:$4 sm:$0xff]   ;;  %v3301_v12 = vld [vmem:[%s4892_s0 + $0x240] ss:$16 sps:$4 sm:$0xff]   ;;  %v3304_v13 = vld [vmem:[%s4892_s0 + $0x248] ss:$16 sps:$4 sm:$0xff]  }
  0x1b   :  { %1270 = vmatpush1.bf16.msra.mxu0 %v3230_v26  ;;  %1429 = vmatpush1.bf16.msra.mxu1 %v3231_v27  ;;  %v3309_v14 = vld [vmem:[%s4892_s0 + $0x264] ss:$16 sps:$4 sm:$0xff]   ;;  %v3312_v15 = vld [vmem:[%s4892_s0 + $0x26c] ss:$16 sps:$4 sm:$0xff]   ;;  %v3307_v16 = vld [vmem:[%s4892_s0 + $0x260] ss:$16 sps:$4 sm:$0xff]  }
  0x1c   :  { %1271 = vmatprep.subr.bf16.mxu0 %v3232_v28  ;;  %1430 = vmatprep.subr.bf16.mxu1 %v3234_v29  ;;  %v3310_v17 = vld [vmem:[%s4892_s0 + $0x268] ss:$16 sps:$4 sm:$0xff]   ;;  %v3315_v18 = vld [vmem:[%s4892_s0 + $0x284] ss:$16 sps:$4 sm:$0xff]   ;;  %v3318_v19 = vld [vmem:[%s4892_s0 + $0x28c] ss:$16 sps:$4 sm:$0xff]  }
  0x1d   :  { %v3313_v20 = vld [vmem:[%s4892_s0 + $0x280] ss:$16 sps:$4 sm:$0xff]   ;;  %v3316_v21 = vld [vmem:[%s4892_s0 + $0x288] ss:$16 sps:$4 sm:$0xff]   ;;  %v3321_v22 = vld [vmem:[%s4892_s0 + $0x2a4] ss:$16 sps:$4 sm:$0xff]  }
  0x1e   :  { %v3324_v23 = vld [vmem:[%s4892_s0 + $0x2ac] ss:$16 sps:$4 sm:$0xff]   ;;  %v3319_v25 = vld [vmem:[%s4892_s0 + $0x2a0] ss:$16 sps:$4 sm:$0xff]   ;;  %v3322_v26 = vld [vmem:[%s4892_s0 + $0x2a8] ss:$16 sps:$4 sm:$0xff]  }
  0x1f   :  { %1272 = vmatpush1.bf16.msra.mxu0 %v3236_v30  ;;  %1431 = vmatpush1.bf16.msra.mxu1 %v3237_v31  ;;  %v3373_v24 = vld [vmem:[%s4893_s1 + $0x34] ss:$24 sps:$4 sm:$0xff]   ;;  %v3381_v29 = vld [vmem:[%s4893_s1 + $0x30] ss:$24 sps:$4 sm:$0xff]  }
  0x20   :  { %1273 = vmatprep.subr.bf16.mxu0 %v3238_v32  ;;  %1432 = vmatprep.subr.bf16.mxu1 %v3240_v33  ;;  %v3327_v27 = vld [vmem:[%s4892_s0 + $0x2c4] ss:$16 sps:$4 sm:$0xff]   ;;  %v3330_v28 = vld [vmem:[%s4892_s0 + $0x2cc] ss:$16 sps:$4 sm:$0xff]   ;;  %v3325_v30 = vld [vmem:[%s4892_s0 + $0x2c0] ss:$16 sps:$4 sm:$0xff]  }
  0x21   :  { %v3328_v31 = vld [vmem:[%s4892_s0 + $0x2c8] ss:$16 sps:$4 sm:$0xff]   ;;  %v3333_v32 = vld [vmem:[%s4892_s0 + $0x2e4] ss:$16 sps:$4 sm:$0xff]   ;;  %v3336_v33 = vld [vmem:[%s4892_s0 + $0x2ec] ss:$16 sps:$4 sm:$0xff]  }
  0x22   :  { %v3352_v48 = vld [vmem:[%s4892_s0 + $0x348] ss:$16 sps:$4 sm:$0xff]  }
  0x23   :  { %1274 = vmatpush1.bf16.msra.mxu0 %v3242_v34  ;;  %1433 = vmatpush1.bf16.msra.mxu1 %v3243_v35  ;;  %v3390_v34 = vld [vmem:[%s4893_s1 + $0xc] ss:$24 sps:$4 sm:$0xff]   ;;  %v3331_v35 = vld [vmem:[%s4892_s0 + $0x2e0] ss:$16 sps:$4 sm:$0xff]  }
  0x24   :  { %1275 = vmatprep.subr.bf16.mxu0 %v3244_v36  ;;  %1434 = vmatprep.subr.bf16.mxu1 %v3246_v37  ;;  %v3334_v36 = vld [vmem:[%s4892_s0 + $0x2e8] ss:$16 sps:$4 sm:$0xff]   ;;  %v3339_v37 = vld [vmem:[%s4892_s0 + $0x304] ss:$16 sps:$4 sm:$0xff]  }
  0x27   :  { %1276 = vmatpush1.bf16.msra.mxu0 %v3248_v38  ;;  %1435 = vmatpush1.bf16.msra.mxu1 %v3249_v39  ;;  %v3342_v38 = vld [vmem:[%s4892_s0 + $0x30c] ss:$16 sps:$4 sm:$0xff]   ;;  %v3337_v39 = vld [vmem:[%s4892_s0 + $0x300] ss:$16 sps:$4 sm:$0xff]  }
  0x28   :  { %1277 = vmatprep.subr.bf16.mxu0 %v3250_v40  ;;  %1436 = vmatprep.subr.bf16.mxu1 %v3252_v41  ;;  %v3340_v40 = vld [vmem:[%s4892_s0 + $0x308] ss:$16 sps:$4 sm:$0xff]   ;;  %v3345_v41 = vld [vmem:[%s4892_s0 + $0x324] ss:$16 sps:$4 sm:$0xff]  }
  0x2b   :  { %1278 = vmatpush1.bf16.msra.mxu0 %v3254_v42  ;;  %1437 = vmatpush1.bf16.msra.mxu1 %v3255_v43  ;;  %v3348_v42 = vld [vmem:[%s4892_s0 + $0x32c] ss:$16 sps:$4 sm:$0xff]   ;;  %v3343_v43 = vld [vmem:[%s4892_s0 + $0x320] ss:$16 sps:$4 sm:$0xff]  }
  0x2c   :  { %1279 = vmatprep.subr.bf16.mxu0 %v3256_v44  ;;  %1438 = vmatprep.subr.bf16.mxu1 %v3258_v45  ;;  %v3346_v44 = vld [vmem:[%s4892_s0 + $0x328] ss:$16 sps:$4 sm:$0xff]   ;;  %v3351_v45 = vld [vmem:[%s4892_s0 + $0x344] ss:$16 sps:$4 sm:$0xff]  }
  0x2f   :  { %1280 = vmatpush1.bf16.msra.mxu0 %v3260_v46  ;;  %1439 = vmatpush1.bf16.msra.mxu1 %v3261_v47  ;;  %v3354_v46 = vld [vmem:[%s4892_s0 + $0x34c] ss:$16 sps:$4 sm:$0xff]   ;;  %v3349_v47 = vld [vmem:[%s4892_s0 + $0x340] ss:$16 sps:$4 sm:$0xff]  }
  0x30   :  { %1281 = vmatprep.subr.bf16.mxu0 %v3262_v49  ;;  %1440 = vmatprep.subr.bf16.mxu1 %v3264_v50  ;;  %v3357_v49 = vld [vmem:[%s4892_s0 + $0x364] ss:$16 sps:$4 sm:$0xff]   ;;  %v3360_v50 = vld [vmem:[%s4892_s0 + $0x36c] ss:$16 sps:$4 sm:$0xff]  }
  0x33   :  { %1282 = vmatpush1.bf16.msra.mxu0 %v3266_v51  ;;  %1441 = vmatpush1.bf16.msra.mxu1 %v3267_v52  ;;  %v3355_v51 = vld [vmem:[%s4892_s0 + $0x360] ss:$16 sps:$4 sm:$0xff]   ;;  %v3358_v52 = vld [vmem:[%s4892_s0 + $0x368] ss:$16 sps:$4 sm:$0xff]  }
  0x34   :  { %1283 = vmatprep.subr.bf16.mxu0 %v3268_v53  ;;  %1442 = vmatprep.subr.bf16.mxu1 %v3270_v54  ;;  %v3363_v53 = vld [vmem:[%s4892_s0 + $0x384] ss:$16 sps:$4 sm:$0xff]   ;;  %v3366_v54 = vld [vmem:[%s4892_s0 + $0x38c] ss:$16 sps:$4 sm:$0xff]  }
  0x37   :  { %1284 = vmatpush1.bf16.msra.mxu0 %v3272_v55  ;;  %1443 = vmatpush1.bf16.msra.mxu1 %v3273_v56  ;;  %v3361_v55 = vld [vmem:[%s4892_s0 + $0x380] ss:$16 sps:$4 sm:$0xff]   ;;  %v3364_v56 = vld [vmem:[%s4892_s0 + $0x388] ss:$16 sps:$4 sm:$0xff]  }
  0x38   :  { %1285 = vmatprep.subr.bf16.mxu0 %v3274_v57  ;;  %1444 = vmatprep.subr.bf16.mxu1 %v3276_v58  ;;  %v3369_v57 = vld [vmem:[%s4892_s0 + $0x3a4] ss:$16 sps:$4 sm:$0xff]   ;;  %v3372_v58 = vld [vmem:[%s4892_s0 + $0x3ac] ss:$16 sps:$4 sm:$0xff]  }
  0x3b   :  { %1286 = vmatpush1.bf16.msra.mxu0 %v3278_v59  ;;  %1445 = vmatpush1.bf16.msra.mxu1 %v3279_v60  ;;  %v3367_v59 = vld [vmem:[%s4892_s0 + $0x3a0] ss:$16 sps:$4 sm:$0xff]   ;;  %v3370_v60 = vld [vmem:[%s4892_s0 + $0x3a8] ss:$16 sps:$4 sm:$0xff]  }
  0x3c   :  { %1287 = vmatprep.subr.bf16.mxu0 %v3280_v61  ;;  %1446 = vmatprep.subr.bf16.mxu1 %v3282_v62  ;;  %v3377_v61 = vld [vmem:[%s4892_s0 + $0x3c4] ss:$16 sps:$4 sm:$0xff]   ;;  %v3380_v62 = vld [vmem:[%s4892_s0 + $0x3cc] ss:$16 sps:$4 sm:$0xff]  }
  0x3f   :  { %1288 = vmatpush1.bf16.msra.mxu0 %v3284_v63  ;;  %1447 = vmatpush1.bf16.msra.mxu1 %v3285_v0  ;;  %v3375_v63 = vld [vmem:[%s4892_s0 + $0x3c0] ss:$16 sps:$4 sm:$0xff]   ;;  %v3378_v0 = vld [vmem:[%s4892_s0 + $0x3c8] ss:$16 sps:$4 sm:$0xff]  }
  0x40   :  { %1310 = vmatprep.subr.bf16.mxu0 %v3291_v1  ;;  %1469 = vmatprep.subr.bf16.mxu1 %v3294_v2  ;;  %v3384_v1 = vld [vmem:[%s4892_s0 + $0x3e4] ss:$16 sps:$4 sm:$0xff]   ;;  %v3387_v2 = vld [vmem:[%s4892_s0 + $0x3ec] ss:$16 sps:$4 sm:$0xff]  }
  0x42   :  { %1290 = vmatmul.mubr.bf16.vlgmr.msra.gmra.mrb[0].mxu0 %v3286_v3  ;;  %1449 = vmatmul.mubr.bf16.vlgmr.msra.gmra.mrb[0].mxu1 %v3286_v3  ;;  %v3382_v3 = vld [vmem:[%s4892_s0 + $0x3e0] ss:$16 sps:$4 sm:$0xff]  }
  0x43   :  { %1311 = vmatpush1.bf16.msra.mxu0 %v3289_v4  ;;  %1470 = vmatpush1.bf16.msra.mxu1 %v3292_v5  ;;  %v3385_v4 = vld [vmem:[%s4892_s0 + $0x3e8] ss:$16 sps:$4 sm:$0xff]   ;;  %v3393_v5 = vld [vmem:[%s4892_s0 + $0x404] ss:$16 sps:$4 sm:$0xff]  }
  0x44   :  { %1312 = vmatprep.subr.bf16.mxu0 %v3297_v6  ;;  %1471 = vmatprep.subr.bf16.mxu1 %v3300_v7  ;;  %v3396_v6 = vld [vmem:[%s4892_s0 + $0x40c] ss:$16 sps:$4 sm:$0xff]   ;;  %v3388_v7 = vld [vmem:[%s4893_s1 + $0x8] ss:$24 sps:$4 sm:$0xff]  }
  0x45   :  { %1299 = vmatprep.mubr.bf16.mxu0 %v3373_v24  ;;  %1458 = vmatprep.mubr.bf16.mxu1 %v3373_v24  ;;  %v3412_v24 = vld [vmem:[%s4892_s0 + $0x468] ss:$16 sps:$4 sm:$0xff]  }
  0x47   :  { %1313 = vmatpush1.bf16.msra.mxu0 %v3295_v8  ;;  %1472 = vmatpush1.bf16.msra.mxu1 %v3298_v9  ;;  %v3391_v8 = vld [vmem:[%s4892_s0 + $0x400] ss:$16 sps:$4 sm:$0xff]   ;;  %v3394_v9 = vld [vmem:[%s4892_s0 + $0x408] ss:$16 sps:$4 sm:$0xff]  }
  0x48   :  { %1314 = vmatprep.subr.bf16.mxu0 %v3303_v10  ;;  %1473 = vmatprep.subr.bf16.mxu1 %v3306_v11  ;;  %v3399_v10 = vld [vmem:[%s4892_s0 + $0x424] ss:$16 sps:$4 sm:$0xff]   ;;  %v3402_v11 = vld [vmem:[%s4892_s0 + $0x42c] ss:$16 sps:$4 sm:$0xff]  }
  0x4a   :  { %1300 = vmatmul.mubr.bf16.gmra.mrb[4].mxu0 %v3381_v29  ;;  %1459 = vmatmul.mubr.bf16.gmra.mrb[4].mxu1 %v3381_v29  ;;  %v3423_v29 = vld [vmem:[%s4892_s0 + $0x4a4] ss:$16 sps:$4 sm:$0xff]  }
  0x4b   :  { %1315 = vmatpush1.bf16.msra.mxu0 %v3301_v12  ;;  %1474 = vmatpush1.bf16.msra.mxu1 %v3304_v13  ;;  %v3475_v12 = vld [vmem:[%s4893_s1 + $0x3c] ss:$24 sps:$4 sm:$0xff]   ;;  %v3397_v13 = vld [vmem:[%s4892_s0 + $0x420] ss:$16 sps:$4 sm:$0xff]  }
  0x4c   :  { %1316 = vmatprep.subr.bf16.mxu0 %v3309_v14  ;;  %1475 = vmatprep.subr.bf16.mxu1 %v3312_v15  ;;  %v3400_v14 = vld [vmem:[%s4892_s0 + $0x428] ss:$16 sps:$4 sm:$0xff]   ;;  %v3405_v15 = vld [vmem:[%s4892_s0 + $0x444] ss:$16 sps:$4 sm:$0xff]  }
  0x4d   :  { %1342 = vmatprep.mubr.bf16.mxu0 %v3390_v34  ;;  %1501 = vmatprep.mubr.bf16.mxu1 %v3390_v34  ;;  %v3432_v34 = vld [vmem:[%s4892_s0 + $0x4cc] ss:$16 sps:$4 sm:$0xff]  }
  0x4f   :  { %1317 = vmatpush1.bf16.msra.mxu0 %v3307_v16  ;;  %1476 = vmatpush1.bf16.msra.mxu1 %v3310_v17  ;;  %v3408_v16 = vld [vmem:[%s4892_s0 + $0x44c] ss:$16 sps:$4 sm:$0xff]   ;;  %v3477_v17 = vld [vmem:[%s4893_s1 + $0x38] ss:$24 sps:$4 sm:$0xff]  }
  0x50   :  { %1318 = vmatprep.subr.bf16.mxu0 %v3315_v18  ;;  %1477 = vmatprep.subr.bf16.mxu1 %v3318_v19  ;;  %v3403_v18 = vld [vmem:[%s4892_s0 + $0x440] ss:$16 sps:$4 sm:$0xff]   ;;  %v3406_v19 = vld [vmem:[%s4892_s0 + $0x448] ss:$16 sps:$4 sm:$0xff]  }
  0x53   :  { %1319 = vmatpush1.bf16.msra.mxu0 %v3313_v20  ;;  %1478 = vmatpush1.bf16.msra.mxu1 %v3316_v21  ;;  %v3411_v20 = vld [vmem:[%s4892_s0 + $0x464] ss:$16 sps:$4 sm:$0xff]   ;;  %v3414_v21 = vld [vmem:[%s4892_s0 + $0x46c] ss:$16 sps:$4 sm:$0xff]  }
  0x54   :  { %1320 = vmatprep.subr.bf16.mxu0 %v3321_v22  ;;  %1479 = vmatprep.subr.bf16.mxu1 %v3324_v23  ;;  %v3492_v22 = vld [vmem:[%s4893_s1 + $0x14] ss:$24 sps:$4 sm:$0xff]   ;;  %v3409_v23 = vld [vmem:[%s4892_s0 + $0x460] ss:$16 sps:$4 sm:$0xff]  }
  0x57   :  { %1321 = vmatpush1.bf16.msra.mxu0 %v3319_v25  ;;  %1480 = vmatpush1.bf16.msra.mxu1 %v3322_v26  ;;  %v3417_v25 = vld [vmem:[%s4892_s0 + $0x484] ss:$16 sps:$4 sm:$0xff]   ;;  %v3420_v26 = vld [vmem:[%s4892_s0 + $0x48c] ss:$16 sps:$4 sm:$0xff]  }
  0x58   :  { %1322 = vmatprep.subr.bf16.mxu0 %v3327_v27  ;;  %1481 = vmatprep.subr.bf16.mxu1 %v3330_v28  ;;  %v3415_v27 = vld [vmem:[%s4892_s0 + $0x480] ss:$16 sps:$4 sm:$0xff]   ;;  %v3418_v28 = vld [vmem:[%s4892_s0 + $0x488] ss:$16 sps:$4 sm:$0xff]  }
  0x5b   :  { %1323 = vmatpush1.bf16.msra.mxu0 %v3325_v30  ;;  %1482 = vmatpush1.bf16.msra.mxu1 %v3328_v31  ;;  %v3426_v30 = vld [vmem:[%s4892_s0 + $0x4ac] ss:$16 sps:$4 sm:$0xff]   ;;  %v3421_v31 = vld [vmem:[%s4892_s0 + $0x4a0] ss:$16 sps:$4 sm:$0xff]  }
  0x5c   :  { %1324 = vmatprep.subr.bf16.mxu0 %v3333_v32  ;;  %1483 = vmatprep.subr.bf16.mxu1 %v3336_v33  ;;  %v3424_v32 = vld [vmem:[%s4892_s0 + $0x4a8] ss:$16 sps:$4 sm:$0xff]   ;;  %v3429_v33 = vld [vmem:[%s4892_s0 + $0x4c4] ss:$16 sps:$4 sm:$0xff]  }
  0x5f   :  { %1325 = vmatpush1.bf16.msra.mxu0 %v3331_v35  ;;  %1484 = vmatpush1.bf16.msra.mxu1 %v3334_v36  ;;  %v3427_v35 = vld [vmem:[%s4892_s0 + $0x4c0] ss:$16 sps:$4 sm:$0xff]   ;;  %v3430_v36 = vld [vmem:[%s4892_s0 + $0x4c8] ss:$16 sps:$4 sm:$0xff]  }
  0x60   :  { %1326 = vmatprep.subr.bf16.mxu0 %v3339_v37  ;;  %1485 = vmatprep.subr.bf16.mxu1 %v3342_v38  ;;  %v3435_v37 = vld [vmem:[%s4892_s0 + $0x4e4] ss:$16 sps:$4 sm:$0xff]   ;;  %v3438_v38 = vld [vmem:[%s4892_s0 + $0x4ec] ss:$16 sps:$4 sm:$0xff]  }
  0x63   :  { %1327 = vmatpush1.bf16.msra.mxu0 %v3337_v39  ;;  %1486 = vmatpush1.bf16.msra.mxu1 %v3340_v40  ;;  %v3433_v39 = vld [vmem:[%s4892_s0 + $0x4e0] ss:$16 sps:$4 sm:$0xff]   ;;  %v3436_v40 = vld [vmem:[%s4892_s0 + $0x4e8] ss:$16 sps:$4 sm:$0xff]  }
  0x64   :  { %1328 = vmatprep.subr.bf16.mxu0 %v3345_v41  ;;  %1487 = vmatprep.subr.bf16.mxu1 %v3348_v42  ;;  %v3441_v41 = vld [vmem:[%s4892_s0 + $0x504] ss:$16 sps:$4 sm:$0xff]   ;;  %v3444_v42 = vld [vmem:[%s4892_s0 + $0x50c] ss:$16 sps:$4 sm:$0xff]  }
  0x67   :  { %1329 = vmatpush1.bf16.msra.mxu0 %v3343_v43  ;;  %1488 = vmatpush1.bf16.msra.mxu1 %v3346_v44  ;;  %v3439_v43 = vld [vmem:[%s4892_s0 + $0x500] ss:$16 sps:$4 sm:$0xff]   ;;  %v3442_v44 = vld [vmem:[%s4892_s0 + $0x508] ss:$16 sps:$4 sm:$0xff]  }
  0x68   :  { %1330 = vmatprep.subr.bf16.mxu0 %v3351_v45  ;;  %1489 = vmatprep.subr.bf16.mxu1 %v3354_v46  ;;  %v3447_v45 = vld [vmem:[%s4892_s0 + $0x524] ss:$16 sps:$4 sm:$0xff]   ;;  %v3450_v46 = vld [vmem:[%s4892_s0 + $0x52c] ss:$16 sps:$4 sm:$0xff]  }
  0x6b   :  { %1331 = vmatpush1.bf16.msra.mxu0 %v3349_v47  ;;  %1490 = vmatpush1.bf16.msra.mxu1 %v3352_v48  ;;  %v3445_v47 = vld [vmem:[%s4892_s0 + $0x520] ss:$16 sps:$4 sm:$0xff]   ;;  %v3448_v48 = vld [vmem:[%s4892_s0 + $0x528] ss:$16 sps:$4 sm:$0xff]  }
  0x6c   :  { %1332 = vmatprep.subr.bf16.mxu0 %v3357_v49  ;;  %1491 = vmatprep.subr.bf16.mxu1 %v3360_v50  ;;  %v3453_v49 = vld [vmem:[%s4892_s0 + $0x544] ss:$16 sps:$4 sm:$0xff]   ;;  %v3456_v50 = vld [vmem:[%s4892_s0 + $0x54c] ss:$16 sps:$4 sm:$0xff]  }
  0x6f   :  { %1333 = vmatpush1.bf16.msra.mxu0 %v3355_v51  ;;  %1492 = vmatpush1.bf16.msra.mxu1 %v3358_v52  ;;  %v3451_v51 = vld [vmem:[%s4892_s0 + $0x540] ss:$16 sps:$4 sm:$0xff]   ;;  %v3454_v52 = vld [vmem:[%s4892_s0 + $0x548] ss:$16 sps:$4 sm:$0xff]  }
  0x70   :  { %1334 = vmatprep.subr.bf16.mxu0 %v3363_v53  ;;  %1493 = vmatprep.subr.bf16.mxu1 %v3366_v54  ;;  %v3459_v53 = vld [vmem:[%s4892_s0 + $0x564] ss:$16 sps:$4 sm:$0xff]   ;;  %v3462_v54 = vld [vmem:[%s4892_s0 + $0x56c] ss:$16 sps:$4 sm:$0xff]  }
  0x73   :  { %1335 = vmatpush1.bf16.msra.mxu0 %v3361_v55  ;;  %1494 = vmatpush1.bf16.msra.mxu1 %v3364_v56  ;;  %v3457_v55 = vld [vmem:[%s4892_s0 + $0x560] ss:$16 sps:$4 sm:$0xff]   ;;  %v3460_v56 = vld [vmem:[%s4892_s0 + $0x568] ss:$16 sps:$4 sm:$0xff]  }
  0x74   :  { %1336 = vmatprep.subr.bf16.mxu0 %v3369_v57  ;;  %1495 = vmatprep.subr.bf16.mxu1 %v3372_v58  ;;  %v3465_v57 = vld [vmem:[%s4892_s0 + $0x584] ss:$16 sps:$4 sm:$0xff]   ;;  %v3468_v58 = vld [vmem:[%s4892_s0 + $0x58c] ss:$16 sps:$4 sm:$0xff]  }
  0x77   :  { %1337 = vmatpush1.bf16.msra.mxu0 %v3367_v59  ;;  %1496 = vmatpush1.bf16.msra.mxu1 %v3370_v60  ;;  %v3463_v59 = vld [vmem:[%s4892_s0 + $0x580] ss:$16 sps:$4 sm:$0xff]   ;;  %v3466_v60 = vld [vmem:[%s4892_s0 + $0x588] ss:$16 sps:$4 sm:$0xff]  }
  0x78   :  { %1338 = vmatprep.subr.bf16.mxu0 %v3377_v61  ;;  %1497 = vmatprep.subr.bf16.mxu1 %v3380_v62  ;;  %v3471_v61 = vld [vmem:[%s4892_s0 + $0x5a4] ss:$16 sps:$4 sm:$0xff]   ;;  %v3474_v62 = vld [vmem:[%s4892_s0 + $0x5ac] ss:$16 sps:$4 sm:$0xff]  }
  0x7b   :  { %1339 = vmatpush1.bf16.msra.mxu0 %v3375_v63  ;;  %1498 = vmatpush1.bf16.msra.mxu1 %v3378_v0  ;;  %v3469_v63 = vld [vmem:[%s4892_s0 + $0x5a0] ss:$16 sps:$4 sm:$0xff]   ;;  %v3472_v0 = vld [vmem:[%s4892_s0 + $0x5a8] ss:$16 sps:$4 sm:$0xff]  }
  0x7c   :  { %1340 = vmatprep.subr.bf16.mxu0 %v3384_v1  ;;  %1499 = vmatprep.subr.bf16.mxu1 %v3387_v2  ;;  %v3480_v1 = vld [vmem:[%s4892_s0 + $0x5c4] ss:$16 sps:$4 sm:$0xff]   ;;  %v3483_v2 = vld [vmem:[%s4892_s0 + $0x5cc] ss:$16 sps:$4 sm:$0xff]  }
  0x7f   :  { %1341 = vmatpush1.bf16.msra.mxu0 %v3382_v3  ;;  %1500 = vmatpush1.bf16.msra.mxu1 %v3385_v4  ;;  %v3478_v3 = vld [vmem:[%s4892_s0 + $0x5c0] ss:$16 sps:$4 sm:$0xff]   ;;  %v3481_v4 = vld [vmem:[%s4892_s0 + $0x5c8] ss:$16 sps:$4 sm:$0xff]  }
  0x80   :  { %1363 = vmatprep.subr.bf16.mxu0 %v3393_v5  ;;  %1522 = vmatprep.subr.bf16.mxu1 %v3396_v6  ;;  %v3486_v5 = vld [vmem:[%s4892_s0 + $0x5e4] ss:$16 sps:$4 sm:$0xff]   ;;  %v3489_v6 = vld [vmem:[%s4892_s0 + $0x5ec] ss:$16 sps:$4 sm:$0xff]  }
  0x82   :  { %1343 = vmatmul.mubr.bf16.vlgmr.msra.gmra.mrb[0].mxu0 %v3388_v7  ;;  %1502 = vmatmul.mubr.bf16.vlgmr.msra.gmra.mrb[0].mxu1 %v3388_v7  ;;  %v3484_v7 = vld [vmem:[%s4892_s0 + $0x5e0] ss:$16 sps:$4 sm:$0xff]  }
  0x83   :  { %1364 = vmatpush1.bf16.msra.mxu0 %v3391_v8  ;;  %1523 = vmatpush1.bf16.msra.mxu1 %v3394_v9  ;;  %v3487_v8 = vld [vmem:[%s4892_s0 + $0x5e8] ss:$16 sps:$4 sm:$0xff]  }
  0x84   :  { %1365 = vmatprep.subr.bf16.mxu0 %v3399_v10  ;;  %1524 = vmatprep.subr.bf16.mxu1 %v3402_v11  ;;  %v3490_v9 = vld [vmem:[%s4893_s1 + $0x10] ss:$24 sps:$4 sm:$0xff]   ;;  %v3493_v10 = vld [vmem:[%s4893_s1 + $0x44] ss:$24 sps:$4 sm:$0xff]   ;;  %v3495_v11 = vld [vmem:[%s4893_s1 + $0x40] ss:$24 sps:$4 sm:$0xff]  }
  0x85   :  { %1352 = vmatprep.mubr.bf16.mxu0 %v3475_v12  ;;  %1511 = vmatprep.mubr.bf16.mxu1 %v3475_v12 }
  0x87   :  { %1366 = vmatpush1.bf16.msra.mxu0 %v3397_v13  ;;  %1525 = vmatpush1.bf16.msra.mxu1 %v3400_v14 }
  0x88   :  { %1367 = vmatprep.subr.bf16.mxu0 %v3405_v15  ;;  %1526 = vmatprep.subr.bf16.mxu1 %v3408_v16 }
  0x8a   :  { %1353 = vmatmul.mubr.bf16.gmra.mrb[4].mxu0 %v3477_v17  ;;  %1512 = vmatmul.mubr.bf16.gmra.mrb[4].mxu1 %v3477_v17 }
  0x8b   :  { %1368 = vmatpush1.bf16.msra.mxu0 %v3403_v18  ;;  %1527 = vmatpush1.bf16.msra.mxu1 %v3406_v19 }
  0x8c   :  { %1369 = vmatprep.subr.bf16.mxu0 %v3411_v20  ;;  %1528 = vmatprep.subr.bf16.mxu1 %v3414_v21 }
  0x8d   :  { %1395 = vmatprep.mubr.bf16.mxu0 %v3492_v22  ;;  %1554 = vmatprep.mubr.bf16.mxu1 %v3492_v22 }
  0x8f   :  { %1370 = vmatpush1.bf16.msra.mxu0 %v3409_v23  ;;  %1529 = vmatpush1.bf16.msra.mxu1 %v3412_v24 }
  0x90   :  { %1371 = vmatprep.subr.bf16.mxu0 %v3417_v25  ;;  %1530 = vmatprep.subr.bf16.mxu1 %v3420_v26 }
  0x93   :  { %1372 = vmatpush1.bf16.msra.mxu0 %v3415_v27  ;;  %1531 = vmatpush1.bf16.msra.mxu1 %v3418_v28 }
  0x94   :  { %1373 = vmatprep.subr.bf16.mxu0 %v3423_v29  ;;  %1532 = vmatprep.subr.bf16.mxu1 %v3426_v30 }
  0x97   :  { %1374 = vmatpush1.bf16.msra.mxu0 %v3421_v31  ;;  %1533 = vmatpush1.bf16.msra.mxu1 %v3424_v32 }
  0x98   :  { %1375 = vmatprep.subr.bf16.mxu0 %v3429_v33  ;;  %1534 = vmatprep.subr.bf16.mxu1 %v3432_v34 }
  0x9b   :  { %1376 = vmatpush1.bf16.msra.mxu0 %v3427_v35  ;;  %1535 = vmatpush1.bf16.msra.mxu1 %v3430_v36 }
  0x9c   :  { %1377 = vmatprep.subr.bf16.mxu0 %v3435_v37  ;;  %1536 = vmatprep.subr.bf16.mxu1 %v3438_v38 }
  0x9f   :  { %1378 = vmatpush1.bf16.msra.mxu0 %v3433_v39  ;;  %1537 = vmatpush1.bf16.msra.mxu1 %v3436_v40 }
  0xa0   :  { %1379 = vmatprep.subr.bf16.mxu0 %v3441_v41  ;;  %1538 = vmatprep.subr.bf16.mxu1 %v3444_v42 }
  0xa3   :  { %1380 = vmatpush1.bf16.msra.mxu0 %v3439_v43  ;;  %1539 = vmatpush1.bf16.msra.mxu1 %v3442_v44 }
  0xa4   :  { %1381 = vmatprep.subr.bf16.mxu0 %v3447_v45  ;;  %1540 = vmatprep.subr.bf16.mxu1 %v3450_v46 }
  0xa7   :  { %1382 = vmatpush1.bf16.msra.mxu0 %v3445_v47  ;;  %1541 = vmatpush1.bf16.msra.mxu1 %v3448_v48 }
  0xa8   :  { %1383 = vmatprep.subr.bf16.mxu0 %v3453_v49  ;;  %1542 = vmatprep.subr.bf16.mxu1 %v3456_v50 }
  0xab   :  { %1384 = vmatpush1.bf16.msra.mxu0 %v3451_v51  ;;  %1543 = vmatpush1.bf16.msra.mxu1 %v3454_v52 }
  0xac   :  { %1385 = vmatprep.subr.bf16.mxu0 %v3459_v53  ;;  %1544 = vmatprep.subr.bf16.mxu1 %v3462_v54 }
  0xaf   :  { %1386 = vmatpush1.bf16.msra.mxu0 %v3457_v55  ;;  %1545 = vmatpush1.bf16.msra.mxu1 %v3460_v56 }
  0xb0   :  { %1387 = vmatprep.subr.bf16.mxu0 %v3465_v57  ;;  %1546 = vmatprep.subr.bf16.mxu1 %v3468_v58 }
  0xb3   :  { %1388 = vmatpush1.bf16.msra.mxu0 %v3463_v59  ;;  %1547 = vmatpush1.bf16.msra.mxu1 %v3466_v60 }
  0xb4   :  { %1389 = vmatprep.subr.bf16.mxu0 %v3471_v61  ;;  %1548 = vmatprep.subr.bf16.mxu1 %v3474_v62 }
  0xb7   :  { %1390 = vmatpush1.bf16.msra.mxu0 %v3469_v63  ;;  %1549 = vmatpush1.bf16.msra.mxu1 %v3472_v0 }
  0xb8   :  { %1391 = vmatprep.subr.bf16.mxu0 %v3480_v1  ;;  %1550 = vmatprep.subr.bf16.mxu1 %v3483_v2 }
  0xbb   :  { %1392 = vmatpush1.bf16.msra.mxu0 %v3478_v3  ;;  %1551 = vmatpush1.bf16.msra.mxu1 %v3481_v4  ;;  %v3514_v4 = vmov 0  }
  0xbc   :  { %1393 = vmatprep.subr.bf16.mxu0 %v3486_v5  ;;  %1552 = vmatprep.subr.bf16.mxu1 %v3489_v6 }
  0xbd   :  { %3188 = vset.pattern.permute.xlu0 %v3514_v4  ;;  %3189 = vset.pattern.permute.xlu1 %v3514_v4 }
  0xbf   :  { %1394 = vmatpush1.bf16.msra.mxu0 %v3484_v7  ;;  %1553 = vmatpush1.bf16.msra.mxu1 %v3487_v8 }
  0xc2   :  { %1396 = vmatmul.mubr.bf16.vlgmr.msra.gmra.mrb[0].mxu0 %v3490_v9  ;;  %1555 = vmatmul.mubr.bf16.vlgmr.msra.gmra.mrb[0].mxu1 %v3490_v9 }
  0xc3   :  { %1405 = vmatprep.mubr.bf16.mxu0 %v3493_v10  ;;  %1564 = vmatprep.mubr.bf16.mxu1 %v3493_v10 }
  0xca   :  { %1406 = vmatmul.mubr.bf16.gmra.mrb[4].mxu0 %v3495_v11  ;;  %1565 = vmatmul.mubr.bf16.gmra.mrb[4].mxu1 %v3495_v11 }
  0xcb   :  { %1818 = vmatprep.mubr.bf16.mxu0 %v3514_v4  ;;  %1861 = vmatprep.mubr.bf16.mxu1 %v3514_v4 }
 0x195   :  { %v4177_v12 = vpop.f32.mrb[0].mxu0  ;;  %v4179_v13 = vpop.f32.mrb[0].mxu1 }
 0x196   :  { %v1583_v14 = vmul.f32 %v4177_v12, %v4177_v12  ;;  %v4183_v15 = vpop.f32.mrb[1].mxu0  ;;  %v4185_v16 = vpop.f32.mrb[1].mxu1  ;;  %v1585_v21 = vmul.f32 %v4179_v13, %v4179_v13 }
 0x197   :  { %v1584_v17 = vmul.f32 %v4183_v15, %v4183_v15  ;;  %v1599_v18 = vadd.f32 %v4183_v15, %v4177_v12  ;;  %v4191_v19 = vpop.f32.mrb[2].mxu0  ;;  %v4193_v20 = vpop.f32.mrb[2].mxu1  ;;  %v1586_v30 = vmul.f32 %v4185_v16, %v4185_v16 }
 0x198   :  { %v1587_v22 = vmul.f32 %v4191_v19, %v4191_v19  ;;  %v4199_v23 = vpop.f32.mrb[3].mxu0  ;;  %v4201_v24 = vpop.f32.mrb[3].mxu1  ;;  %v1589_v29 = vmul.f32 %v4193_v20, %v4193_v20 }
 0x199   :  { %v1588_v25 = vmul.f32 %v4199_v23, %v4199_v23  ;;  %v1604_v26 = vadd.f32 %v4199_v23, %v4191_v19  ;;  %v1600_v27 = vadd.f32 %v1599_v18, %v4179_v13  ;;  %v1619_v28 = vadd.f32 %v1584_v17, %v1583_v14 }
 0x19a   :  { %v1590_v39 = vmul.f32 %v4201_v24, %v4201_v24 }
 0x19b   :  { %v1601_v31 = vadd.f32 %v1600_v27, %v4185_v16  ;;  %v1620_v32 = vadd.f32 %v1619_v28, %v1585_v21  ;;  %v1605_v33 = vadd.f32 %v1604_v26, %v4193_v20  ;;  %v1624_v34 = vadd.f32 %v1588_v25, %v1587_v22 }
 0x19d   :  { %v4214_v35 = vpop.f32.mrb[4].mxu1  ;;  %1602 = vadd.xlane.f32.xlu0 %v1601_v31  ;;  %v4216_v36 = vpop.f32.mrb[4].mxu0  ;;  %v1621_v37 = vadd.f32 %v1620_v32, %v1586_v30  ;;  %v1606_v38 = vadd.f32 %v1605_v33, %v4201_v24  ;;  %v1625_v40 = vadd.f32 %v1624_v34, %v1589_v29 }
 0x19e   :  { %v1591_v41 = vmul.f32 %v4216_v36, %v4216_v36  ;;  %v4223_v42 = vpop.f32.mrb[5].mxu0  ;;  %v4225_v43 = vpop.f32.mrb[5].mxu1  ;;  %v1593_v49 = vmul.f32 %v4214_v35, %v4214_v35 }
 0x19f   :  { %v1592_v44 = vmul.f32 %v4223_v42, %v4223_v42  ;;  %v1609_v45 = vadd.f32 %v4223_v42, %v4216_v36  ;;  %v4231_v46 = vpop.f32.mrb[6].mxu1  ;;  %1622 = vadd.xlane.f32.xlu1 %v1621_v37  ;;  %v4233_v47 = vpop.f32.mrb[6].mxu0  ;;  %v1626_v48 = vadd.f32 %v1625_v40, %v1590_v39  ;;  %v1594_v58 = vmul.f32 %v4225_v43, %v4225_v43 }
 0x1a0   :  { %v1595_v50 = vmul.f32 %v4233_v47, %v4233_v47  ;;  %v4239_v51 = vpop.f32.mrb[7].mxu0  ;;  %v4241_v52 = vpop.f32.mrb[7].mxu1  ;;  %v1597_v57 = vmul.f32 %v4231_v46, %v4231_v46 }
 0x1a1   :  { %v1596_v53 = vmul.f32 %v4239_v51, %v4239_v51  ;;  %v1614_v54 = vadd.f32 %v4239_v51, %v4233_v47  ;;  %1607 = vadd.xlane.f32.xlu0 %v1606_v38  ;;  %v1610_v55 = vadd.f32 %v1609_v45, %v4214_v35  ;;  %v1629_v56 = vadd.f32 %v1592_v44, %v1591_v41 }
 0x1a2   :  { %v1598_v1 = vmul.f32 %v4241_v52, %v4241_v52 }
 0x1a3   :  { %1627 = vadd.xlane.f32.xlu1 %v1626_v48  ;;  %v1611_v59 = vadd.f32 %v1610_v55, %v4225_v43  ;;  %v1615_v60 = vadd.f32 %v1614_v54, %v4231_v46  ;;  %v1630_v61 = vadd.f32 %v1629_v56, %v1593_v49  ;;  %v1634_v62 = vadd.f32 %v1596_v53, %v1595_v50  ;;  %v1575_v48 = vld [vmem:[%s4894_s2] sm:$0xff]  ;;  %v1576_v55 = vld [vmem:[%s4894_s2 + $0x8] sm:$0xff] }
 0x1a5   :  { %1612 = vadd.xlane.f32.xlu0 %v1611_v59  ;;  %v1616_v63 = vadd.f32 %v1615_v60, %v4241_v52  ;;  %v1631_v0 = vadd.f32 %v1630_v61, %v1594_v58  ;;  %v1635_v2 = vadd.f32 %v1634_v62, %v1597_v57  ;;  %v1579_v60 = vld [vmem:[%s4895_s3] sm:$0xff] }
 0x1a7   :  { %1617 = vadd.xlane.f32.xlu1 %v1616_v63  ;;  %v1636_v3 = vadd.f32 %v1635_v2, %v1598_v1  ;;  %v1580_v63 = vld [vmem:[%s4895_s3 + $0x8] sm:$0xff]  ;;  %v1577_v2 = vld [vmem:[%s4894_s2 + $0x10] sm:$0xff] }
 0x1a9   :  { %1632 = vadd.xlane.f32.xlu0 %v1631_v0 }
 0x1ab   :  { %1637 = vadd.xlane.f32.xlu1 %v1636_v3 }
 0x22a   :  { %v1603_v5 = vpop.xlane.xlu0 %1602 }
 0x22b   :  { %v1639_v6 = vmul.f32 0.001953125, %v1603_v5 }
 0x22c   :  { %v1623_v7 = vpop.xlane.xlu1 %1622 }
 0x22d   :  { %v1647_v8 = vmul.f32 %v1639_v6, %v1639_v6  ;;  %v1643_v9 = vmul.f32 0.001953125, %v1623_v7 }
 0x22e   :  { %v1608_v10 = vpop.xlane.xlu0 %1607 }
 0x22f   :  { %v1651_v11 = vsub.f32 %v1643_v9, %v1647_v8  ;;  %v1640_v14 = vmul.f32 0.001953125, %v1608_v10  ;;  %v1581_v9 = vld [vmem:[%s4895_s3 + $0x10] sm:$0xff] }
 0x230   :  { %v1628_v17 = vpop.xlane.xlu1 %1627 }
 0x231   :  { %v1655_v18 = vmax.f32 %v1651_v11, 0.0  ;;  %v1648_v21 = vmul.f32 %v1640_v14, %v1640_v14  ;;  %v1644_v22 = vmul.f32 0.001953125, %v1628_v17 }
 0x232   :  { %v1613_v25 = vpop.xlane.xlu0 %1612 }
 0x233   :  { %v1659_v26 = vadd.f32 1e-05, %v1655_v18  ;;  %v1652_v27 = vsub.f32 %v1644_v22, %v1648_v21  ;;  %v1641_v28 = vmul.f32 0.001953125, %v1613_v25 }
 0x234   :  { %v1618_v29 = vpop.xlane.xlu1 %1617 }
 0x235   :  { %3502 = vrsqrt.f32 %v1659_v26  ;;  %v1656_v30 = vmax.f32 %v1652_v27, 0.0  ;;  %v1642_v31 = vmul.f32 0.001953125, %v1618_v29  ;;  %v1649_v34 = vmul.f32 %v1641_v28, %v1641_v28 }
 0x236   :  { %v1633_v32 = vpop.xlane.xlu0 %1632 }
 0x237   :  { %v1660_v33 = vadd.f32 1e-05, %v1656_v30  ;;  %v1645_v37 = vmul.f32 0.001953125, %v1633_v32  ;;  %v1650_v39 = vmul.f32 %v1642_v31, %v1642_v31 }
 0x238   :  { %v1638_v38 = vpop.xlane.xlu1 %1637 }
 0x239   :  { %3504 = vrsqrt.f32 %v1660_v33  ;;  %v1653_v40 = vsub.f32 %v1645_v37, %v1649_v34  ;;  %v1646_v41 = vmul.f32 0.001953125, %v1638_v38 }
 0x23b   :  { %v1657_v44 = vmax.f32 %v1653_v40, 0.0  ;;  %v1654_v45 = vsub.f32 %v1646_v41, %v1650_v39 }
 0x23d   :  { %v1661_v50 = vadd.f32 1e-05, %v1657_v44  ;;  %v1658_v53 = vmax.f32 %v1654_v45, 0.0 }
 0x23f   :  { %v3503_v49 = vpop.eup %3502  ;;  %3506 = vrsqrt.f32 %v1661_v50  ;;  %v1662_v57 = vadd.f32 1e-05, %v1658_v53 }
 0x240   :  { %v1667_v54 = vmul.f32 %v3503_v49, %v1575_v48 }
 0x241   :  { %3508 = vrsqrt.f32 %v1662_v57 }
 0x242   :  { %1681 = vperm.xlu0 %3188, %v1667_v54   ;;  %v1671_v59 = vmul.f32 %v1667_v54, %v1639_v6  ;;  %v1578_v6 = vld [vmem:[%s4894_s2 + $0x18] sm:$0xff] }
 0x243   :  { %v3505_v56 = vpop.eup %3504 }
 0x244   :  { %v1668_v58 = vmul.f32 %v3505_v56, %v1576_v55  ;;  %v1675_v61 = vsub.f32 %v1579_v60, %v1671_v59 }
 0x246   :  { %1686 = vperm.xlu1 %3189, %v1668_v58   ;;  %v1672_v62 = vmul.f32 %v1668_v58, %v1640_v14  ;;  %v1582_v14 = vld [vmem:[%s4895_s3 + $0x18] sm:$0xff] }
 0x248   :  { %v1676_v0 = vsub.f32 %v1580_v63, %v1672_v62 }
 0x249   :  { %v3507_v1 = vpop.eup %3506 }
 0x24a   :  { %1717 = vperm.xlu1 %3189, %v1675_v61   ;;  %v1669_v3 = vmul.f32 %v3507_v1, %v1577_v2 }
 0x24b   :  { %v3509_v5 = vpop.eup %3508 }
 0x24c   :  { %v1670_v7 = vmul.f32 %v3509_v5, %v1578_v6  ;;  %v1673_v8 = vmul.f32 %v1669_v3, %v1641_v28 }
 0x24e   :  { %1722 = vperm.xlu1 %3189, %v1676_v0   ;;  %v1677_v10 = vsub.f32 %v1581_v9, %v1673_v8  ;;  %v1674_v11 = vmul.f32 %v1670_v7, %v1642_v31 }
 0x250   :  { %v1678_v17 = vsub.f32 %v1582_v14, %v1674_v11 }
 0x252   :  { %1691 = vperm.xlu1 %3189, %v1669_v3  }
 0x256   :  { %1696 = vperm.xlu1 %3189, %v1670_v7  }
 0x25a   :  { %1727 = vperm.xlu1 %3189, %v1677_v10  }
 0x25e   :  { %1732 = vperm.xlu1 %3189, %v1678_v17  }
 0x2c1   :  { %v1682_v21 = vpop.permute.xlu0 %1681 }
 0x2c2   :  { %v1699_v25 = vmul.f32 %v1682_v21, %v4177_v12  ;;  %v1700_v26 = vmul.f32 %v1682_v21, %v4183_v15  ;;  %v1701_v27 = vmul.f32 %v1682_v21, %v4179_v13  ;;  %v1702_v28 = vmul.f32 %v1682_v21, %v4185_v16 }
 0x2c5   :  { %v1687_v18 = vpop.permute.xlu1 %1686 }
 0x2c6   :  { %v1703_v29 = vmul.f32 %v1687_v18, %v4191_v19  ;;  %v1704_v30 = vmul.f32 %v1687_v18, %v4199_v23  ;;  %v1705_v31 = vmul.f32 %v1687_v18, %v4193_v20  ;;  %v1706_v32 = vmul.f32 %v1687_v18, %v4201_v24 }
 0x2c9   :  { %v1718_v22 = vpop.permute.xlu1 %1717 }
 0x2ca   :  { %v1735_v33 = vadd.f32 %v1718_v22, %v1699_v25  ;;  %v1736_v34 = vadd.f32 %v1718_v22, %v1700_v26  ;;  %v1737_v37 = vadd.f32 %v1718_v22, %v1701_v27  ;;  %v1738_v38 = vadd.f32 %v1718_v22, %v1702_v28  ;;  %v3498_v25 = vld [vmem:[%s4896_s4 + $0x10] sm:$0xff]   ;;  %v3499_v26 = vld [vmem:[%s4896_s4 + $0x18] sm:$0xff]  }
 0x2cc   :  { %v1751_v19 = vmax.f32 %v1735_v33, 0.0  ;;  %v1752_v48 = vmax.f32 %v1736_v34, 0.0  ;;  %v1753_v23 = vmax.f32 %v1737_v37, 0.0  ;;  %v1754_v49 = vmax.f32 %v1738_v38, 0.0 }
 0x2cd   :  { %v1723_v39 = vpop.permute.xlu1 %1722 }
 0x2ce   :  { %v1739_v12 = vadd.f32 %v1723_v39, %v1703_v29  ;;  %v1740_v40 = vadd.f32 %v1723_v39, %v1704_v30  ;;  %v1741_v15 = vadd.f32 %v1723_v39, %v1705_v31  ;;  %v1742_v41 = vadd.f32 %v1723_v39, %v1706_v32 }
 0x2d0   :  { %v1755_v13 = vmax.f32 %v1739_v12, 0.0  ;;  %v1756_v44 = vmax.f32 %v1740_v40, 0.0  ;;  %v1757_v16 = vmax.f32 %v1741_v15, 0.0  ;;  %v1758_v45 = vmax.f32 %v1742_v41, 0.0 }
 0x2d1   :  { %v1692_v20 = vpop.permute.xlu1 %1691 }
 0x2d2   :  { %v4293_v50 = vpack.c.bf16 %v1756_v44, %v1752_v48  ;;  %v4295_v24 = vpack.c.bf16 %v1758_v45, %v1754_v49  ;;  %v4297_v53 = vpack.c.bf16 %v1755_v13, %v1751_v19  ;;  %v4299_v54 = vpack.c.bf16 %v1757_v16, %v1753_v23 }
 0x2d3   :  { %v1707_v56 = vmul.f32 %v1692_v20, %v4216_v36  ;;  %v1708_v57 = vmul.f32 %v1692_v20, %v4223_v42  ;;  %v1709_v58 = vmul.f32 %v1692_v20, %v4214_v35  ;;  %v1710_v59 = vmul.f32 %v1692_v20, %v4225_v43 }
 0x2d4   :  { %1786 = vmatprep.subr.bf16.mxu0 %v4293_v50  ;;  %1829 = vmatprep.subr.bf16.mxu1 %v4295_v24 }
 0x2d5   :  { %v1697_v55 = vpop.permute.xlu1 %1696  ;;  %1787 = vmatpush1.bf16.msra.mxu0 %v4297_v53  ;;  %1830 = vmatpush1.bf16.msra.mxu1 %v4299_v54 }
 0x2d6   :  { %v1711_v1 = vmul.f32 %v1697_v55, %v4233_v47  ;;  %v1712_v2 = vmul.f32 %v1697_v55, %v4239_v51  ;;  %v1713_v3 = vmul.f32 %v1697_v55, %v4231_v46  ;;  %v1714_v5 = vmul.f32 %v1697_v55, %v4241_v52  ;;  %v3496_v46 = vld [vmem:[%s4896_s4] sm:$0xff]   ;;  %v3497_v52 = vld [vmem:[%s4896_s4 + $0x8] sm:$0xff]  }
 0x2d9   :  { %v1728_v60 = vpop.permute.xlu1 %1727 }
 0x2da   :  { %v1743_v61 = vadd.f32 %v1728_v60, %v1707_v56  ;;  %v1744_v62 = vadd.f32 %v1728_v60, %v1708_v57  ;;  %v1745_v63 = vadd.f32 %v1728_v60, %v1709_v58  ;;  %v1746_v0 = vadd.f32 %v1728_v60, %v1710_v59 }
 0x2dc   :  { %v1759_v8 = vmax.f32 %v1743_v61, 0.0  ;;  %v1760_v43 = vmax.f32 %v1744_v62, 0.0  ;;  %v1761_v9 = vmax.f32 %v1745_v63, 0.0  ;;  %v1762_v10 = vmax.f32 %v1746_v0, 0.0 }
 0x2dd   :  { %v1733_v36 = vpop.permute.xlu1 %1732 }
 0x2de   :  { %v1747_v6 = vadd.f32 %v1733_v36, %v1711_v1  ;;  %v1748_v42 = vadd.f32 %v1733_v36, %v1712_v2  ;;  %v1749_v7 = vadd.f32 %v1733_v36, %v1713_v3  ;;  %v1750_v35 = vadd.f32 %v1733_v36, %v1714_v5 }
 0x2e0   :  { %v1763_v11 = vmax.f32 %v1747_v6, 0.0  ;;  %v1764_v14 = vmax.f32 %v1748_v42, 0.0  ;;  %v1765_v17 = vmax.f32 %v1749_v7, 0.0  ;;  %v1766_v18 = vmax.f32 %v1750_v35, 0.0 }
 0x2e2   :  { %v1772_v47 = vpack.c.bf16 %v1764_v14, %v1760_v43  ;;  %v1774_v21 = vpack.c.bf16 %v1766_v18, %v1762_v10  ;;  %v1771_v51 = vpack.c.bf16 %v1763_v11, %v1759_v8  ;;  %v1773_v22 = vpack.c.bf16 %v1765_v17, %v1761_v9 }
 0x2e4   :  { %1788 = vmatprep.subr.bf16.mxu0 %v1772_v47  ;;  %1831 = vmatprep.subr.bf16.mxu1 %v1774_v21 }
 0x2e5   :  { %1789 = vmatpush1.bf16.msra.mxu0 %v1771_v51  ;;  %1832 = vmatpush1.bf16.msra.mxu1 %v1773_v22 }
 0x2e6   :  { %1883 = vmatprep.subr.bf16.mxu0 %v4293_v50  ;;  %1926 = vmatprep.subr.bf16.mxu1 %v4295_v24 }
 0x2e8   :  { %3120 = vmatmul.mubr.msk.bf16.vlgmr.msra.gmra.mrb[8].mxu0 %vm1782_vm0, %v3496_v46  ;;  %3121 = vmatmul.mubr.msk.bf16.vlgmr.msra.gmra.mrb[8].mxu1 %vm1782_vm0, %v3496_v46 }
 0x2e9   :  { %1884 = vmatpush1.bf16.msra.mxu0 %v4297_v53  ;;  %1927 = vmatpush1.bf16.msra.mxu1 %v4299_v54 }
 0x2ea   :  { %1885 = vmatprep.subr.bf16.mxu0 %v1772_v47  ;;  %1928 = vmatprep.subr.bf16.mxu1 %v1774_v21 }
 0x2eb   :  { %1915 = vmatprep.mubr.bf16.mxu0 %v3514_v4  ;;  %1958 = vmatprep.mubr.bf16.mxu1 %v3514_v4 }
 0x2ed   :  { %1886 = vmatpush1.bf16.msra.mxu0 %v1771_v51  ;;  %1929 = vmatpush1.bf16.msra.mxu1 %v1773_v22 }
 0x2ee   :  { %1980 = vmatprep.subr.bf16.mxu0 %v4293_v50  ;;  %2023 = vmatprep.subr.bf16.mxu1 %v4295_v24 }
 0x2f0   :  { %3125 = vmatmul.mubr.msk.bf16.vlgmr.msra.gmra.mrb[12].mxu0 %vm1782_vm0, %v3497_v52  ;;  %3126 = vmatmul.mubr.msk.bf16.vlgmr.msra.gmra.mrb[12].mxu1 %vm1782_vm0, %v3497_v52 }
 0x2f1   :  { %1981 = vmatpush1.bf16.msra.mxu0 %v4297_v53  ;;  %2024 = vmatpush1.bf16.msra.mxu1 %v4299_v54 }
 0x2f2   :  { %1982 = vmatprep.subr.bf16.mxu0 %v1772_v47  ;;  %2025 = vmatprep.subr.bf16.mxu1 %v1774_v21 }
 0x2f3   :  { %2012 = vmatprep.mubr.bf16.mxu0 %v3514_v4  ;;  %2055 = vmatprep.mubr.bf16.mxu1 %v3514_v4 }
 0x2f5   :  { %1983 = vmatpush1.bf16.msra.mxu0 %v1771_v51  ;;  %2026 = vmatpush1.bf16.msra.mxu1 %v1773_v22 }
 0x2f6   :  { %2077 = vmatprep.subr.bf16.mxu0 %v4293_v50  ;;  %2120 = vmatprep.subr.bf16.mxu1 %v4295_v24 }
 0x2f8   :  { %3130 = vmatmul.mubr.msk.bf16.vlgmr.msra.gmra.mrb[16].mxu0 %vm1782_vm0, %v3498_v25  ;;  %3131 = vmatmul.mubr.msk.bf16.vlgmr.msra.gmra.mrb[16].mxu1 %vm1782_vm0, %v3498_v25 }
 0x2f9   :  { %2078 = vmatpush1.bf16.msra.mxu0 %v4297_v53  ;;  %2121 = vmatpush1.bf16.msra.mxu1 %v4299_v54 }
 0x2fa   :  { %2079 = vmatprep.subr.bf16.mxu0 %v1772_v47  ;;  %2122 = vmatprep.subr.bf16.mxu1 %v1774_v21 }
 0x2fb   :  { %2109 = vmatprep.mubr.bf16.mxu0 %v3514_v4  ;;  %2152 = vmatprep.mubr.bf16.mxu1 %v3514_v4 }
 0x2fd   :  { %2080 = vmatpush1.bf16.msra.mxu0 %v1771_v51  ;;  %2123 = vmatpush1.bf16.msra.mxu1 %v1773_v22 }
 0x300   :  { %3135 = vmatmul.mubr.msk.bf16.vlgmr.msra.gmra.mrb[20].mxu0 %vm1782_vm0, %v3499_v26  ;;  %3136 = vmatmul.mubr.msk.bf16.vlgmr.msra.gmra.mrb[20].mxu1 %vm1782_vm0, %v3499_v26 }
 0x301   :  { %2487 = vmatprep.mubr.bf16.mxu0 %v3514_v4  ;;  %2538 = vmatprep.mubr.bf16.mxu1 %v3514_v4 }
 0x3bb   :  { %v4353_v27 = vpop.f32.mrb[8].mxu0  ;;  %v4355_v28 = vpop.f32.mrb[8].mxu1 }
 0x3bc   :  { %v2167_v29 = vmul.f32 %v4353_v27, %v4353_v27  ;;  %v4359_v30 = vpop.f32.mrb[9].mxu0  ;;  %v4361_v31 = vpop.f32.mrb[9].mxu1  ;;  %v2169_v34 = vmul.f32 %v4355_v28, %v4355_v28 }
 0x3bd   :  { %v2168_v32 = vmul.f32 %v4359_v30, %v4359_v30  ;;  %v2199_v33 = vadd.f32 %v4359_v30, %v4353_v27  ;;  %v4369_v37 = vpop.f32.mrb[10].mxu0  ;;  %v4371_v38 = vpop.f32.mrb[10].mxu1  ;;  %v2170_v12 = vmul.f32 %v4361_v31, %v4361_v31 }
 0x3be   :  { %v2183_v39 = vmul.f32 %v4369_v37, %v4369_v37  ;;  %v4377_v40 = vpop.f32.mrb[11].mxu0  ;;  %v2185_v15 = vmul.f32 %v4371_v38, %v4371_v38  ;;  %v4381_v41 = vpop.f32.mrb[11].mxu1 }
 0x3bf   :  { %v2233_v13 = vadd.f32 %v2168_v32, %v2167_v29  ;;  %v2200_v44 = vadd.f32 %v2199_v33, %v4355_v28  ;;  %v2184_v16 = vmul.f32 %v4377_v40, %v4377_v40  ;;  %v2216_v45 = vadd.f32 %v4377_v40, %v4369_v37 }
 0x3c0   :  { %v2186_v24 = vmul.f32 %v4381_v41, %v4381_v41 }
 0x3c1   :  { %v2234_v19 = vadd.f32 %v2233_v13, %v2169_v34  ;;  %v2201_v48 = vadd.f32 %v2200_v44, %v4361_v31  ;;  %v2250_v23 = vadd.f32 %v2184_v16, %v2183_v39  ;;  %v2217_v49 = vadd.f32 %v2216_v45, %v4371_v38 }
 0x3c3   :  { %v2235_v20 = vadd.f32 %v2234_v19, %v2170_v12  ;;  %v2251_v50 = vadd.f32 %v2250_v23, %v2185_v15  ;;  %v2218_v53 = vadd.f32 %v2217_v49, %v4381_v41  ;;  %v4393_v54 = vpop.f32.mrb[12].mxu0  ;;  %v4395_v55 = vpop.f32.mrb[12].mxu1 }
 0x3c4   :  { %v2171_v56 = vmul.f32 %v4393_v54, %v4393_v54  ;;  %v2202_v57 = vadd.f32 %v2201_v48, %v4393_v54  ;;  %v4400_v58 = vpop.f32.mrb[13].mxu0  ;;  %v4402_v59 = vpop.f32.mrb[13].mxu1  ;;  %v2173_v62 = vmul.f32 %v4395_v55, %v4395_v55 }
 0x3c5   :  { %v2252_v60 = vadd.f32 %v2251_v50, %v2186_v24  ;;  %v2172_v61 = vmul.f32 %v4400_v58, %v4400_v58  ;;  %v4408_v63 = vpop.f32.mrb[14].mxu0  ;;  %v4410_v0 = vpop.f32.mrb[14].mxu1  ;;  %v2174_v9 = vmul.f32 %v4402_v59, %v4402_v59 }
 0x3c6   :  { %v2236_v1 = vadd.f32 %v2235_v20, %v2171_v56  ;;  %v2203_v2 = vadd.f32 %v2202_v57, %v4400_v58  ;;  %v2187_v3 = vmul.f32 %v4408_v63, %v4408_v63  ;;  %v2219_v5 = vadd.f32 %v2218_v53, %v4408_v63  ;;  %v4416_v36 = vpop.f32.mrb[15].mxu0  ;;  %v4418_v6 = vpop.f32.mrb[15].mxu1 }
 0x3c7   :  { %v2188_v42 = vmul.f32 %v4416_v36, %v4416_v36  ;;  %v2189_v10 = vmul.f32 %v4410_v0, %v4410_v0  ;;  %v2190_v47 = vmul.f32 %v4418_v6, %v4418_v6 }
 0x3c8   :  { %v2237_v7 = vadd.f32 %v2236_v1, %v2172_v61  ;;  %v2204_v35 = vadd.f32 %v2203_v2, %v4395_v55  ;;  %v2253_v8 = vadd.f32 %v2252_v60, %v2187_v3  ;;  %v2220_v43 = vadd.f32 %v2219_v5, %v4416_v36 }
 0x3ca   :  { %v2238_v11 = vadd.f32 %v2237_v7, %v2173_v62  ;;  %v2205_v14 = vadd.f32 %v2204_v35, %v4402_v59  ;;  %v2254_v17 = vadd.f32 %v2253_v8, %v2188_v42  ;;  %v2221_v18 = vadd.f32 %v2220_v43, %v4410_v0 }
 0x3cb   :  { %v4432_v21 = vpop.f32.mrb[16].mxu0  ;;  %v4434_v51 = vpop.f32.mrb[16].mxu1 }
 0x3cc   :  { %v2239_v22 = vadd.f32 %v2238_v11, %v2174_v9  ;;  %v2255_v46 = vadd.f32 %v2254_v17, %v2189_v10  ;;  %v2222_v52 = vadd.f32 %v2221_v18, %v4418_v6  ;;  %v2175_v25 = vmul.f32 %v4432_v21, %v4432_v21  ;;  %v4439_v26 = vpop.f32.mrb[17].mxu0  ;;  %v4441_v29 = vpop.f32.mrb[17].mxu1 }
 0x3cd   :  { %v2206_v32 = vadd.f32 %v2205_v14, %v4432_v21  ;;  %v2176_v33 = vmul.f32 %v4439_v26, %v4439_v26  ;;  %v2177_v34 = vmul.f32 %v4434_v51, %v4434_v51  ;;  %v4448_v39 = vpop.f32.mrb[18].mxu0  ;;  %v4450_v12 = vpop.f32.mrb[18].mxu1  ;;  %v2178_v53 = vmul.f32 %v4441_v29, %v4441_v29 }
 0x3ce   :  { %v2256_v15 = vadd.f32 %v2255_v46, %v2190_v47  ;;  %v2240_v13 = vadd.f32 %v2239_v22, %v2175_v25  ;;  %v2191_v44 = vmul.f32 %v4448_v39, %v4448_v39  ;;  %v2223_v16 = vadd.f32 %v2222_v52, %v4448_v39  ;;  %v4455_v45 = vpop.f32.mrb[19].mxu0  ;;  %v4457_v19 = vpop.f32.mrb[19].mxu1 }
 0x3cf   :  { %v2207_v48 = vadd.f32 %v2206_v32, %v4439_v26  ;;  %v2192_v23 = vmul.f32 %v4455_v45, %v4455_v45  ;;  %v2193_v60 = vmul.f32 %v4450_v12, %v4450_v12  ;;  %v2194_v1 = vmul.f32 %v4457_v19, %v4457_v19 }
 0x3d0   :  { %v2241_v49 = vadd.f32 %v2240_v13, %v2176_v33  ;;  %v2257_v20 = vadd.f32 %v2256_v15, %v2191_v44  ;;  %v2224_v50 = vadd.f32 %v2223_v16, %v4455_v45 }
 0x3d1   :  { %v2208_v24 = vadd.f32 %v2207_v48, %v4434_v51 }
 0x3d2   :  { %v2242_v56 = vadd.f32 %v2241_v49, %v2177_v34  ;;  %v2258_v57 = vadd.f32 %v2257_v20, %v2192_v23  ;;  %v2225_v61 = vadd.f32 %v2224_v50, %v4450_v12 }
 0x3d3   :  { %v2209_v62 = vadd.f32 %v2208_v24, %v4441_v29  ;;  %v4472_v2 = vpop.f32.mrb[20].mxu0  ;;  %v4474_v3 = vpop.f32.mrb[20].mxu1 }
 0x3d4   :  { %v2243_v5 = vadd.f32 %v2242_v56, %v2178_v53  ;;  %v2259_v42 = vadd.f32 %v2258_v57, %v2193_v60  ;;  %v2226_v7 = vadd.f32 %v2225_v61, %v4457_v19  ;;  %v2179_v35 = vmul.f32 %v4472_v2, %v4472_v2  ;;  %v4479_v8 = vpop.f32.mrb[21].mxu0  ;;  %v4481_v43 = vpop.f32.mrb[21].mxu1 }
 0x3d5   :  { %v2210_v9 = vadd.f32 %v2209_v62, %v4472_v2  ;;  %v2180_v10 = vmul.f32 %v4479_v8, %v4479_v8  ;;  %v2181_v11 = vmul.f32 %v4474_v3, %v4474_v3  ;;  %v4488_v14 = vpop.f32.mrb[22].mxu0  ;;  %v4490_v17 = vpop.f32.mrb[22].mxu1  ;;  %v2182_v16 = vmul.f32 %v4481_v43, %v4481_v43 }
 0x3d6   :  { %v2260_v18 = vadd.f32 %v2259_v42, %v2194_v1  ;;  %v2244_v47 = vadd.f32 %v2243_v5, %v2179_v35  ;;  %v2195_v22 = vmul.f32 %v4488_v14, %v4488_v14  ;;  %v2227_v46 = vadd.f32 %v2226_v7, %v4488_v14  ;;  %v4495_v52 = vpop.f32.mrb[23].mxu0  ;;  %v4497_v25 = vpop.f32.mrb[23].mxu1 }
 0x3d7   :  { %v2211_v32 = vadd.f32 %v2210_v9, %v4479_v8  ;;  %v2196_v33 = vmul.f32 %v4495_v52, %v4495_v52  ;;  %v2197_v48 = vmul.f32 %v4490_v17, %v4490_v17  ;;  %v2198_v53 = vmul.f32 %v4497_v25, %v4497_v25 }
 0x3d8   :  { %v2261_v34 = vadd.f32 %v2260_v18, %v2195_v22  ;;  %v2228_v15 = vadd.f32 %v2227_v46, %v4495_v52  ;;  %v2245_v13 = vadd.f32 %v2244_v47, %v2180_v10 }
 0x3d9   :  { %v2212_v44 = vadd.f32 %v2211_v32, %v4474_v3 }
 0x3da   :  { %v2229_v23 = vadd.f32 %v2228_v15, %v4490_v17  ;;  %v2262_v49 = vadd.f32 %v2261_v34, %v2196_v33  ;;  %v2246_v20 = vadd.f32 %v2245_v13, %v2181_v11  ;;  %v2164_v34 = vld [vmem:[%s4897_s5 + $0x8] sm:$0xff]  ;;  %v2163_v15 = vld [vmem:[%s4897_s5] sm:$0xff] }
 0x3db   :  { %v2213_v50 = vadd.f32 %v2212_v44, %v4481_v43 }
 0x3dc   :  { %v2230_v24 = vadd.f32 %v2229_v23, %v4497_v25  ;;  %v2263_v56 = vadd.f32 %v2262_v49, %v2197_v48  ;;  %v2247_v57 = vadd.f32 %v2246_v20, %v2182_v16  ;;  %v2165_v23 = vld [vmem:[%s4898_s6] sm:$0xff]  ;;  %v2166_v49 = vld [vmem:[%s4898_s6 + $0x8] sm:$0xff] }
 0x3dd   :  { %2214 = vadd.xlane.f32.xlu1 %v2213_v50 }
 0x3de   :  { %2231 = vadd.xlane.f32.xlu0 %v2230_v24  ;;  %v2264_v60 = vadd.f32 %v2263_v56, %v2198_v53  ;;  %v2422_v56 = vld [vmem:[%s4899_s8] sm:$0xff] }
 0x3e1   :  { %2265 = vadd.xlane.f32.xlu1 %v2264_v60  ;;  %v2424_v60 = vld [vmem:[%s4899_s8 + $0x10] sm:$0xf] }
 0x3e2   :  { %2248 = vadd.xlane.f32.xlu0 %v2247_v57  ;;  %v2423_v57 = vld [vmem:[%s4899_s8 + $0x8] sm:$0xff] }
 0x46a   :  { %v2215_v61 = vpop.xlane.xlu1 %2214 }
 0x46b   :  { %v2232_v62 = vpop.xlane.xlu0 %2231  ;;  %v2267_v1 = vmul.f32 0.00048828125, %v2215_v61 }
 0x46c   :  { %v2268_v5 = vmul.f32 0.00048828125, %v2232_v62 }
 0x46d   :  { %v2271_v10 = vmul.f32 %v2267_v1, %v2267_v1 }
 0x46e   :  { %v2272_v42 = vmul.f32 %v2268_v5, %v2268_v5  ;;  %v2266_v7 = vpop.xlane.xlu1 %2265 }
 0x46f   :  { %v2270_v35 = vmul.f32 0.00048828125, %v2266_v7  ;;  %v2249_v9 = vpop.xlane.xlu0 %2248 }
 0x470   :  { %v2269_v11 = vmul.f32 0.00048828125, %v2249_v9 }
 0x471   :  { %v2274_v18 = vsub.f32 %v2270_v35, %v2272_v42 }
 0x472   :  { %v2273_v47 = vsub.f32 %v2269_v11, %v2271_v10 }
 0x473   :  { %v2276_v22 = vmax.f32 %v2274_v18, 0.0 }
 0x474   :  { %v2275_v46 = vmax.f32 %v2273_v47, 0.0 }
 0x475   :  { %v2278_v32 = vadd.f32 1e-05, %v2276_v22 }
 0x476   :  { %v2277_v33 = vadd.f32 1e-05, %v2275_v46 }
 0x477   :  { %3510 = vrsqrt.f32 %v2278_v32 }
 0x478   :  { %3512 = vrsqrt.f32 %v2277_v33 }
 0x481   :  { %v3511_v13 = vpop.eup %3510 }
 0x482   :  { %v3513_v44 = vpop.eup %3512  ;;  %v2282_v16 = vmul.f32 %v3511_v13, %v2164_v34 }
 0x483   :  { %v2281_v48 = vmul.f32 %v3513_v44, %v2163_v15 }
 0x484   :  { %2294 = vperm.xlu1 %3189, %v2282_v16   ;;  %v2284_v20 = vmul.f32 %v2282_v16, %v2268_v5 }
 0x485   :  { %2289 = vperm.xlu0 %3188, %v2281_v48   ;;  %v2283_v50 = vmul.f32 %v2281_v48, %v2267_v1 }
 0x486   :  { %v2286_v53 = vsub.f32 %v2166_v49, %v2284_v20 }
 0x487   :  { %v2285_v24 = vsub.f32 %v2165_v23, %v2283_v50 }
 0x489   :  { %2331 = vperm.xlu1 %3189, %v2285_v24   ;;  %2336 = vperm.xlu0 %3188, %v2286_v53  }
 0x48d   :  { %2427 = vperm.xlu1 %3189, %v2422_v56   ;;  %2432 = vperm.xlu0 %3188, %v2423_v57  }
 0x491   :  { %2437 = vperm.xlu1 %3189, %v2424_v60   ;;  %v4597_v60 = vld [vmem:[%s4900_s7] sm:$0xff]  }
 0x503   :  { %v4534_v61 = vpop.permute.xlu1 %2294 }
 0x504   :  { %v4536_v62 = vpop.permute.xlu0 %2289  ;;  %v2314_v1 = vmul.f32 %v4534_v61, %v4377_v40  ;;  %v2316_v5 = vmul.f32 %v4534_v61, %v4381_v41  ;;  %v2313_v42 = vmul.f32 %v4534_v61, %v4369_v37  ;;  %v2315_v7 = vmul.f32 %v4534_v61, %v4371_v38 }
 0x505   :  { %v2298_v35 = vmul.f32 %v4536_v62, %v4359_v30  ;;  %v2300_v9 = vmul.f32 %v4536_v62, %v4361_v31  ;;  %v2297_v10 = vmul.f32 %v4536_v62, %v4353_v27  ;;  %v2299_v40 = vmul.f32 %v4536_v62, %v4355_v28 }
 0x506   :  { %v2302_v41 = vmul.f32 %v4536_v62, %v4400_v58  ;;  %v2318_v37 = vmul.f32 %v4534_v61, %v4416_v36  ;;  %v2304_v38 = vmul.f32 %v4536_v62, %v4402_v59  ;;  %v2320_v30 = vmul.f32 %v4534_v61, %v4418_v6 }
 0x507   :  { %v2301_v31 = vmul.f32 %v4536_v62, %v4393_v54  ;;  %v2317_v27 = vmul.f32 %v4534_v61, %v4408_v63  ;;  %v2303_v28 = vmul.f32 %v4536_v62, %v4395_v55  ;;  %v2319_v58 = vmul.f32 %v4534_v61, %v4410_v0 }
 0x508   :  { %v4570_v11 = vpop.permute.xlu1 %2331  ;;  %v4572_v36 = vpop.permute.xlu0 %2336  ;;  %v2306_v59 = vmul.f32 %v4536_v62, %v4439_v26  ;;  %v2322_v54 = vmul.f32 %v4534_v61, %v4455_v45  ;;  %v2308_v63 = vmul.f32 %v4536_v62, %v4441_v29  ;;  %v2324_v55 = vmul.f32 %v4534_v61, %v4457_v19 }
 0x509   :  { %v2340_v6 = vadd.f32 %v4570_v11, %v2298_v35  ;;  %v2356_v0 = vadd.f32 %v4572_v36, %v2314_v1  ;;  %v2342_v18 = vadd.f32 %v4570_v11, %v2300_v9  ;;  %v2358_v47 = vadd.f32 %v4572_v36, %v2316_v5 }
 0x50a   :  { %v2339_v22 = vadd.f32 %v4570_v11, %v2297_v10  ;;  %v2355_v26 = vadd.f32 %v4572_v36, %v2313_v42  ;;  %v2341_v45 = vadd.f32 %v4570_v11, %v2299_v40  ;;  %v2357_v46 = vadd.f32 %v4572_v36, %v2315_v7 }
 0x50b   :  { %v2372_v29 = vmax.f32 %v2340_v6, 0.0  ;;  %v2388_v32 = vmax.f32 %v2356_v0, 0.0  ;;  %v2374_v33 = vmax.f32 %v2342_v18, 0.0  ;;  %v2390_v19 = vmax.f32 %v2358_v47, 0.0 }
 0x50c   :  { %v2371_v34 = vmax.f32 %v2339_v22, 0.0  ;;  %v2387_v15 = vmax.f32 %v2355_v26, 0.0  ;;  %v2373_v13 = vmax.f32 %v2341_v45, 0.0  ;;  %v2389_v44 = vmax.f32 %v2357_v46, 0.0 }
 0x50d   :  { %v2407_v16 = vpack.c.bf16 %v2388_v32, %v2372_v29  ;;  %v2409_v48 = vpack.c.bf16 %v2390_v19, %v2374_v33  ;;  %v2344_v23 = vadd.f32 %v4570_v11, %v2302_v41  ;;  %v2360_v49 = vadd.f32 %v4572_v36, %v2318_v37  ;;  %v4626_v29 = vld [vmem:[%s4900_s7 + $0x8] ss:$0 sps:$4 sm:$0x33]  }
 0x50e   :  { %v2406_v20 = vpack.c.bf16 %v2387_v15, %v2371_v34  ;;  %v2408_v50 = vpack.c.bf16 %v2389_v44, %v2373_v13  ;;  %v2346_v24 = vadd.f32 %v4570_v11, %v2304_v38  ;;  %v2362_v53 = vadd.f32 %v4572_v36, %v2320_v30 }
 0x50f   :  { %2455 = vmatprep.subr.bf16.mxu0 %v2407_v16  ;;  %2506 = vmatprep.subr.bf16.mxu1 %v2409_v48  ;;  %v2376_v56 = vmax.f32 %v2344_v23, 0.0  ;;  %v2392_v57 = vmax.f32 %v2360_v49, 0.0  ;;  %v2343_v1 = vadd.f32 %v4570_v11, %v2301_v31  ;;  %v2359_v5 = vadd.f32 %v4572_v36, %v2317_v27 }
 0x510   :  { %2456 = vmatpush1.bf16.msra.mxu0 %v2406_v20  ;;  %2507 = vmatpush1.bf16.msra.mxu1 %v2408_v50  ;;  %v2378_v42 = vmax.f32 %v2346_v24, 0.0  ;;  %v2394_v7 = vmax.f32 %v2362_v53, 0.0  ;;  %v2345_v35 = vadd.f32 %v4570_v11, %v2303_v28  ;;  %v2361_v9 = vadd.f32 %v4572_v36, %v2319_v58 }
 0x511   :  { %v2411_v10 = vpack.c.bf16 %v2392_v57, %v2376_v56  ;;  %v2375_v40 = vmax.f32 %v2343_v1, 0.0  ;;  %v2391_v41 = vmax.f32 %v2359_v5, 0.0  ;;  %v2348_v37 = vadd.f32 %v4570_v11, %v2306_v59 }
 0x512   :  { %v2413_v38 = vpack.c.bf16 %v2394_v7, %v2378_v42  ;;  %v2377_v30 = vmax.f32 %v2345_v35, 0.0  ;;  %v2393_v6 = vmax.f32 %v2361_v9, 0.0  ;;  %v2364_v31 = vadd.f32 %v4572_v36, %v2322_v54 }
 0x513   :  { %2557 = vmatprep.subr.bf16.mxu0 %v2411_v10  ;;  %3139 = vmatmul.mubr.msk.bf16.vlgmr.msra.gmra.mrb[24].mxu0 %vm2448_vm1, %v4597_v60  ;;  %v2410_v27 = vpack.c.bf16 %v2391_v41, %v2375_v40  ;;  %v2380_v0 = vmax.f32 %v2348_v37, 0.0  ;;  %v2350_v28 = vadd.f32 %v4570_v11, %v2308_v63  ;;  %v2366_v58 = vadd.f32 %v4572_v36, %v2324_v55 }
 0x514   :  { %2608 = vmatprep.subr.bf16.mxu1 %v2413_v38  ;;  %3141 = vmatmul.mubr.msk.bf16.vlgmr.msra.gmra.mrb[24].mxu1 %vm2448_vm1, %v4597_v60  ;;  %v2412_v59 = vpack.c.bf16 %v2393_v6, %v2377_v30  ;;  %v2396_v18 = vmax.f32 %v2364_v31, 0.0  ;;  %v2305_v47 = vmul.f32 %v4536_v62, %v4432_v21  ;;  %v2321_v54 = vmul.f32 %v4534_v61, %v4448_v39 }
 0x515   :  { %2558 = vmatpush1.bf16.msra.mxu0 %v2410_v27  ;;  %v2382_v22 = vmax.f32 %v2350_v28, 0.0  ;;  %v2398_v26 = vmax.f32 %v2366_v58, 0.0  ;;  %2497 = vmatprep.mubr.bf16.mxu0 %v3514_v4  ;;  %v2307_v63 = vmul.f32 %v4536_v62, %v4434_v51  ;;  %v2323_v55 = vmul.f32 %v4534_v61, %v4450_v12 }
 0x516   :  { %2609 = vmatpush1.bf16.msra.mxu1 %v2412_v59  ;;  %v2415_v45 = vpack.c.bf16 %v2396_v18, %v2380_v0  ;;  %2548 = vmatprep.mubr.bf16.mxu1 %v3514_v4  ;;  %v2347_v21 = vadd.f32 %v4570_v11, %v2305_v47  ;;  %v2363_v46 = vadd.f32 %v4572_v36, %v2321_v54 }
 0x517   :  { %v2417_v39 = vpack.c.bf16 %v2398_v26, %v2382_v22  ;;  %v2349_v32 = vadd.f32 %v4570_v11, %v2307_v63  ;;  %v2365_v51 = vadd.f32 %v4572_v36, %v2323_v55  ;;  %v2310_v12 = vmul.f32 %v4536_v62, %v4479_v8 }
 0x518   :  { %2659 = vmatprep.subr.bf16.mxu0 %v2415_v45  ;;  %v2379_v33 = vmax.f32 %v2347_v21, 0.0  ;;  %v2395_v19 = vmax.f32 %v2363_v46, 0.0  ;;  %v2326_v34 = vmul.f32 %v4534_v61, %v4495_v52  ;;  %v2312_v15 = vmul.f32 %v4536_v62, %v4481_v43 }
 0x519   :  { %2710 = vmatprep.subr.bf16.mxu1 %v2417_v39  ;;  %v2381_v13 = vmax.f32 %v2349_v32, 0.0  ;;  %v2397_v44 = vmax.f32 %v2365_v51, 0.0  ;;  %v2352_v16 = vadd.f32 %v4570_v11, %v2310_v12  ;;  %v2328_v48 = vmul.f32 %v4534_v61, %v4497_v25 }
 0x51a   :  { %v2414_v23 = vpack.c.bf16 %v2395_v19, %v2379_v33  ;;  %v2368_v8 = vadd.f32 %v4572_v36, %v2326_v34  ;;  %v2354_v49 = vadd.f32 %v4570_v11, %v2312_v15  ;;  %v2309_v20 = vmul.f32 %v4536_v62, %v4472_v2 }
 0x51b   :  { %3140 = vmatmul.mubr.msk.bf16.gmra.mrb[28].mxu0 %vm2448_vm1, %v4626_v29  ;;  %v2416_v43 = vpack.c.bf16 %v2397_v44, %v2381_v13  ;;  %v2384_v52 = vmax.f32 %v2352_v16, 0.0  ;;  %v2370_v50 = vadd.f32 %v4572_v36, %v2328_v48  ;;  %v2325_v24 = vmul.f32 %v4534_v61, %v4488_v14 }
 0x51c   :  { %3142 = vmatmul.mubr.msk.bf16.gmra.mrb[28].mxu1 %vm2448_vm1, %v4626_v29  ;;  %2589 = vmatprep.mubr.bf16.mxu0 %v3514_v4  ;;  %v2400_v25 = vmax.f32 %v2368_v8, 0.0  ;;  %v2386_v53 = vmax.f32 %v2354_v49, 0.0  ;;  %v2351_v56 = vadd.f32 %v4570_v11, %v2309_v20  ;;  %v2311_v2 = vmul.f32 %v4536_v62, %v4474_v3 }
 0x51d   :  { %2640 = vmatprep.mubr.bf16.mxu1 %v3514_v4  ;;  %v2402_v57 = vmax.f32 %v2370_v50, 0.0  ;;  %v2367_v1 = vadd.f32 %v4572_v36, %v2325_v24  ;;  %v2327_v14 = vmul.f32 %v4534_v61, %v4490_v17  ;;  %v4694_v17 = vpop.permute.xlu1 %2427  ;;  %v4696_v61 = vpop.permute.xlu0 %2432 }
 0x51e   :  { %v2419_v5 = vpack.c.bf16 %v2400_v25, %v2384_v52  ;;  %v2383_v42 = vmax.f32 %v2351_v56, 0.0  ;;  %v2353_v7 = vadd.f32 %v4570_v11, %v2311_v2 }
 0x51f   :  { %v2421_v35 = vpack.c.bf16 %v2402_v57, %v2386_v53  ;;  %v2399_v9 = vmax.f32 %v2367_v1, 0.0  ;;  %v2369_v10 = vadd.f32 %v4572_v36, %v2327_v14 }
 0x520   :  { %v2385_v40 = vmax.f32 %v2353_v7, 0.0 }
 0x521   :  { %v2418_v41 = vpack.c.bf16 %v2399_v9, %v2383_v42  ;;  %v2401_v37 = vmax.f32 %v2369_v10, 0.0  ;;  %v4730_v54 = vpop.permute.xlu1 %2437 }
 0x523   :  { %3143 = vmatmul.mubr.msk.bf16.vlgmr.msra.gmra.mrb[32].mxu0 %vm2448_vm1, %v4597_v60  ;;  %v2420_v3 = vpack.c.bf16 %v2401_v37, %v2385_v40 }
 0x524   :  { %3145 = vmatmul.mubr.msk.bf16.vlgmr.msra.gmra.mrb[32].mxu1 %vm2448_vm1, %v4597_v60  ;;  %2660 = vmatpush1.bf16.msra.mxu0 %v2414_v23 }
 0x525   :  { %2711 = vmatpush1.bf16.msra.mxu1 %v2416_v43  ;;  %2761 = vmatprep.subr.bf16.mxu0 %v2419_v5 }
 0x526   :  { %2812 = vmatprep.subr.bf16.mxu1 %v2421_v35  ;;  %2599 = vmatprep.mubr.bf16.mxu0 %v3514_v4 }
 0x527   :  { %2650 = vmatprep.mubr.bf16.mxu1 %v3514_v4 }
 0x52b   :  { %3144 = vmatmul.mubr.msk.bf16.gmra.mrb[36].mxu0 %vm2448_vm1, %v4626_v29 }
 0x52c   :  { %3146 = vmatmul.mubr.msk.bf16.gmra.mrb[36].mxu1 %vm2448_vm1, %v4626_v29  ;;  %2691 = vmatprep.mubr.bf16.mxu0 %v3514_v4 }
 0x52d   :  { %2742 = vmatprep.mubr.bf16.mxu1 %v3514_v4 }
 0x533   :  { %3147 = vmatmul.mubr.msk.bf16.vlgmr.msra.gmra.mrb[40].mxu0 %vm2448_vm1, %v4597_v60 }
 0x534   :  { %3149 = vmatmul.mubr.msk.bf16.vlgmr.msra.gmra.mrb[40].mxu1 %vm2448_vm1, %v4597_v60  ;;  %2762 = vmatpush1.bf16.msra.mxu0 %v2418_v41 }
 0x535   :  { %2813 = vmatpush1.bf16.msra.mxu1 %v2420_v3  ;;  %2701 = vmatprep.mubr.bf16.mxu0 %v3514_v4 }
 0x536   :  { %2752 = vmatprep.mubr.bf16.mxu1 %v3514_v4 }
 0x53b   :  { %3148 = vmatmul.mubr.msk.bf16.gmra.mrb[44].mxu0 %vm2448_vm1, %v4626_v29 }
 0x53c   :  { %3150 = vmatmul.mubr.msk.bf16.gmra.mrb[44].mxu1 %vm2448_vm1, %v4626_v29  ;;  %2793 = vmatprep.mubr.bf16.mxu0 %v3514_v4 }
 0x53d   :  { %2844 = vmatprep.mubr.bf16.mxu1 %v3514_v4 }
 0x543   :  { %3151 = vmatmul.mubr.msk.bf16.vlgmr.msra.gmra.mrb[48].mxu0 %vm2448_vm1, %v4597_v60 }
 0x544   :  { %3153 = vmatmul.mubr.msk.bf16.vlgmr.msra.gmra.mrb[48].mxu1 %vm2448_vm1, %v4597_v60  ;;  %2803 = vmatprep.mubr.bf16.mxu0 %v3514_v4 }
 0x545   :  { %2854 = vmatprep.mubr.bf16.mxu1 %v3514_v4 }
 0x54b   :  { %3152 = vmatmul.mubr.msk.bf16.gmra.mrb[52].mxu0 %vm2448_vm1, %v4626_v29 }
 0x54c   :  { %3154 = vmatmul.mubr.msk.bf16.gmra.mrb[52].mxu1 %vm2448_vm1, %v4626_v29 }
 0x5e6   :  { %v2489_v62 = vpop.f32.mrb[24].mxu0 }
 0x5e7   :  { %v2490_v11 = vadd.f32 %v2489_v62, %v4694_v17  ;;  %v2540_v36 = vpop.f32.mrb[24].mxu1  ;;  %v2491_v38 = vpop.f32.mrb[25].mxu0 }
 0x5e8   :  { %v2541_v60 = vadd.f32 %v2540_v36, %v4694_v17  ;;  %v2492_v30 = vadd.f32 %v2491_v38, %v4694_v17  ;;  %v2542_v4 = vpop.f32.mrb[25].mxu1  ;;  %v2493_v6 = vpop.f32.mrb[26].mxu0 }
 0x5e9   :  { %2863 = vst [vmem:[%s4901_s9] sm:$0xff] %v2490_v11  ;;  %v2543_v31 = vadd.f32 %v2542_v4, %v4694_v17  ;;  %v2494_v27 = vadd.f32 %v2493_v6, %v4696_v61  ;;  %v2544_v0 = vpop.f32.mrb[26].mxu1  ;;  %v2495_v28 = vpop.f32.mrb[27].mxu0 }
 0x5ea   :  { %2865 = vst [vmem:[%s4901_s9 + $0x10] sm:$0xff] %v2541_v60  ;;  %2864 = vst [vmem:[%s4901_s9 + $0x8] sm:$0xff] %v2492_v30  ;;  %v2545_v58 = vadd.f32 %v2544_v0, %v4696_v61  ;;  %v2496_v59 = vadd.f32 %v2495_v28, %v4696_v61  ;;  %v2546_v18 = vpop.f32.mrb[27].mxu1 }
 0x5eb   :  { %2866 = vst [vmem:[%s4901_s9 + $0x18] sm:$0xff] %v2543_v31  ;;  %2879 = vst [vmem:[%s4901_s9 + $0x80] sm:$0xff] %v2494_v27  ;;  %v2547_v47 = vadd.f32 %v2546_v18, %v4696_v61 }
 0x5ec   :  { %2881 = vst [vmem:[%s4901_s9 + $0x90] sm:$0xff] %v2545_v58  ;;  %2880 = vst [vmem:[%s4901_s9 + $0x88] sm:$0xff] %v2496_v59 }
 0x5ed   :  { %2882 = vst [vmem:[%s4901_s9 + $0x98] sm:$0xff] %v2547_v47 }
 0x5ee   :  { %v2499_v22 = vpop.f32.mrb[28].mxu0 }
 0x5ef   :  { %v2500_v26 = vadd.f32 %v2499_v22, %v4730_v54  ;;  %v2550_v63 = vpop.f32.mrb[28].mxu1  ;;  %v2501_v55 = vpop.f32.mrb[29].mxu0 }
 0x5f0   :  { %v2551_v45 = vadd.f32 %v2550_v63, %v4730_v54  ;;  %v2502_v21 = vadd.f32 %v2501_v55, %v4730_v54  ;;  %v2552_v46 = vpop.f32.mrb[29].mxu1  ;;  %v2503_v39 = vpop.f32.mrb[30].mxu0 }
 0x5f1   :  { %2895 = vst [vmem:[%s4901_s9 + $0x100] sm:$0xf] %v2500_v26  ;;  %v2553_v29 = vadd.f32 %v2552_v46, %v4730_v54  ;;  %v2554_v32 = vpop.f32.mrb[30].mxu1  ;;  %v2504_v51 = vpop.f32.mrb[31].mxu0 }
 0x5f2   :  { %2897 = vst [vmem:[%s4901_s9 + $0x110] sm:$0xf] %v2551_v45  ;;  %2896 = vst [vmem:[%s4901_s9 + $0x108] sm:$0xf] %v2502_v21  ;;  %v2555_v12 = vpop.f32.mrb[31].mxu1 }
 0x5f3   :  { %2898 = vst [vmem:[%s4901_s9 + $0x118] sm:$0xf] %v2553_v29 }
 0x5f6   :  { %v2591_v33 = vpop.f32.mrb[32].mxu0 }
 0x5f7   :  { %v2592_v19 = vadd.f32 %v2591_v33, %v4694_v17  ;;  %v2642_v34 = vpop.f32.mrb[32].mxu1  ;;  %v2593_v15 = vpop.f32.mrb[33].mxu0 }
 0x5f8   :  { %v2643_v13 = vadd.f32 %v2642_v34, %v4694_v17  ;;  %v2594_v44 = vadd.f32 %v2593_v15, %v4694_v17  ;;  %v2644_v16 = vpop.f32.mrb[33].mxu1  ;;  %v2595_v48 = vpop.f32.mrb[34].mxu0 }
 0x5f9   :  { %2867 = vst [vmem:[%s4901_s9 + $0x20] sm:$0xff] %v2592_v19  ;;  %v2645_v23 = vadd.f32 %v2644_v16, %v4694_v17  ;;  %v2596_v8 = vadd.f32 %v2595_v48, %v4696_v61  ;;  %v2646_v49 = vpop.f32.mrb[34].mxu1  ;;  %v2597_v20 = vpop.f32.mrb[35].mxu0 }
 0x5fa   :  { %2869 = vst [vmem:[%s4901_s9 + $0x30] sm:$0xff] %v2643_v13  ;;  %2868 = vst [vmem:[%s4901_s9 + $0x28] sm:$0xff] %v2594_v44  ;;  %v2647_v43 = vadd.f32 %v2646_v49, %v4696_v61  ;;  %v2598_v52 = vadd.f32 %v2597_v20, %v4696_v61  ;;  %v2648_v50 = vpop.f32.mrb[35].mxu1 }
 0x5fb   :  { %2870 = vst [vmem:[%s4901_s9 + $0x38] sm:$0xff] %v2645_v23  ;;  %2883 = vst [vmem:[%s4901_s9 + $0xa0] sm:$0xff] %v2596_v8  ;;  %v2649_v24 = vadd.f32 %v2648_v50, %v4696_v61 }
 0x5fc   :  { %2885 = vst [vmem:[%s4901_s9 + $0xb0] sm:$0xff] %v2647_v43  ;;  %2884 = vst [vmem:[%s4901_s9 + $0xa8] sm:$0xff] %v2598_v52 }
 0x5fd   :  { %2886 = vst [vmem:[%s4901_s9 + $0xb8] sm:$0xff] %v2649_v24 }
 0x5fe   :  { %v2601_v25 = vpop.f32.mrb[36].mxu0 }
 0x5ff   :  { %v2602_v53 = vadd.f32 %v2601_v25, %v4730_v54  ;;  %v2652_v56 = vpop.f32.mrb[36].mxu1  ;;  %v2603_v2 = vpop.f32.mrb[37].mxu0 }
 0x600   :  { %v2653_v57 = vadd.f32 %v2652_v56, %v4730_v54  ;;  %v2604_v1 = vadd.f32 %v2603_v2, %v4730_v54  ;;  %v2654_v14 = vpop.f32.mrb[37].mxu1  ;;  %v2605_v5 = vpop.f32.mrb[38].mxu0 }
 0x601   :  { %2899 = vst [vmem:[%s4901_s9 + $0x120] sm:$0xf] %v2602_v53  ;;  %v2655_v42 = vadd.f32 %v2654_v14, %v4730_v54  ;;  %v2656_v7 = vpop.f32.mrb[38].mxu1  ;;  %v2606_v35 = vpop.f32.mrb[39].mxu0 }
 0x602   :  { %2901 = vst [vmem:[%s4901_s9 + $0x130] sm:$0xf] %v2653_v57  ;;  %2900 = vst [vmem:[%s4901_s9 + $0x128] sm:$0xf] %v2604_v1  ;;  %v2657_v9 = vpop.f32.mrb[39].mxu1 }
 0x603   :  { %2902 = vst [vmem:[%s4901_s9 + $0x138] sm:$0xf] %v2655_v42 }
 0x606   :  { %v2693_v10 = vpop.f32.mrb[40].mxu0 }
 0x607   :  { %v2694_v40 = vadd.f32 %v2693_v10, %v4694_v17  ;;  %v2744_v41 = vpop.f32.mrb[40].mxu1  ;;  %v2695_v37 = vpop.f32.mrb[41].mxu0 }
 0x608   :  { %v2745_v3 = vadd.f32 %v2744_v41, %v4694_v17  ;;  %v2696_v62 = vadd.f32 %v2695_v37, %v4694_v17  ;;  %v2746_v11 = vpop.f32.mrb[41].mxu1  ;;  %v2697_v36 = vpop.f32.mrb[42].mxu0 }
 0x609   :  { %2871 = vst [vmem:[%s4901_s9 + $0x40] sm:$0xff] %v2694_v40  ;;  %v2747_v38 = vadd.f32 %v2746_v11, %v4694_v17  ;;  %v2698_v60 = vadd.f32 %v2697_v36, %v4696_v61  ;;  %v2748_v30 = vpop.f32.mrb[42].mxu1  ;;  %v2699_v4 = vpop.f32.mrb[43].mxu0 }
 0x60a   :  { %2873 = vst [vmem:[%s4901_s9 + $0x50] sm:$0xff] %v2745_v3  ;;  %2872 = vst [vmem:[%s4901_s9 + $0x48] sm:$0xff] %v2696_v62  ;;  %v2749_v6 = vadd.f32 %v2748_v30, %v4696_v61  ;;  %v2700_v31 = vadd.f32 %v2699_v4, %v4696_v61  ;;  %v2750_v27 = vpop.f32.mrb[43].mxu1 }
 0x60b   :  { %2874 = vst [vmem:[%s4901_s9 + $0x58] sm:$0xff] %v2747_v38  ;;  %2887 = vst [vmem:[%s4901_s9 + $0xc0] sm:$0xff] %v2698_v60  ;;  %v2751_v0 = vadd.f32 %v2750_v27, %v4696_v61 }
 0x60c   :  { %2889 = vst [vmem:[%s4901_s9 + $0xd0] sm:$0xff] %v2749_v6  ;;  %2888 = vst [vmem:[%s4901_s9 + $0xc8] sm:$0xff] %v2700_v31 }
 0x60d   :  { %2890 = vst [vmem:[%s4901_s9 + $0xd8] sm:$0xff] %v2751_v0 }
 0x60e   :  { %v2703_v28 = vpop.f32.mrb[44].mxu0 }
 0x60f   :  { %v2704_v58 = vadd.f32 %v2703_v28, %v4730_v54  ;;  %v2754_v59 = vpop.f32.mrb[44].mxu1  ;;  %v2705_v18 = vpop.f32.mrb[45].mxu0 }
 0x610   :  { %v2755_v47 = vadd.f32 %v2754_v59, %v4730_v54  ;;  %v2706_v22 = vadd.f32 %v2705_v18, %v4730_v54  ;;  %v2756_v26 = vpop.f32.mrb[45].mxu1  ;;  %v2707_v63 = vpop.f32.mrb[46].mxu0 }
 0x611   :  { %2903 = vst [vmem:[%s4901_s9 + $0x140] sm:$0xf] %v2704_v58  ;;  %v2757_v55 = vadd.f32 %v2756_v26, %v4730_v54  ;;  %v2758_v45 = vpop.f32.mrb[46].mxu1  ;;  %v2708_v21 = vpop.f32.mrb[47].mxu0 }
 0x612   :  { %2905 = vst [vmem:[%s4901_s9 + $0x150] sm:$0xf] %v2755_v47  ;;  %2904 = vst [vmem:[%s4901_s9 + $0x148] sm:$0xf] %v2706_v22  ;;  %v2759_v46 = vpop.f32.mrb[47].mxu1 }
 0x613   :  { %2906 = vst [vmem:[%s4901_s9 + $0x158] sm:$0xf] %v2757_v55 }
 0x616   :  { %v2795_v39 = vpop.f32.mrb[48].mxu0 }
 0x617   :  { %v2796_v29 = vadd.f32 %v2795_v39, %v4694_v17  ;;  %v2846_v32 = vpop.f32.mrb[48].mxu1  ;;  %v2797_v51 = vpop.f32.mrb[49].mxu0 }
 0x618   :  { %v2847_v12 = vadd.f32 %v2846_v32, %v4694_v17  ;;  %v2798_v33 = vadd.f32 %v2797_v51, %v4694_v17  ;;  %v2848_v19 = vpop.f32.mrb[49].mxu1  ;;  %v2799_v34 = vpop.f32.mrb[50].mxu0 }
 0x619   :  { %2875 = vst [vmem:[%s4901_s9 + $0x60] sm:$0xff] %v2796_v29  ;;  %v2849_v15 = vadd.f32 %v2848_v19, %v4694_v17  ;;  %v2800_v13 = vadd.f32 %v2799_v34, %v4696_v61  ;;  %v2850_v44 = vpop.f32.mrb[50].mxu1  ;;  %v2801_v16 = vpop.f32.mrb[51].mxu0 }
 0x61a   :  { %2877 = vst [vmem:[%s4901_s9 + $0x70] sm:$0xff] %v2847_v12  ;;  %2876 = vst [vmem:[%s4901_s9 + $0x68] sm:$0xff] %v2798_v33  ;;  %v2851_v48 = vadd.f32 %v2850_v44, %v4696_v61  ;;  %v2802_v23 = vadd.f32 %v2801_v16, %v4696_v61  ;;  %v2852_v8 = vpop.f32.mrb[51].mxu1 }
 0x61b   :  { %2878 = vst [vmem:[%s4901_s9 + $0x78] sm:$0xff] %v2849_v15  ;;  %2891 = vst [vmem:[%s4901_s9 + $0xe0] sm:$0xff] %v2800_v13  ;;  %v2853_v17 = vadd.f32 %v2852_v8, %v4696_v61 }
 0x61c   :  { %2893 = vst [vmem:[%s4901_s9 + $0xf0] sm:$0xff] %v2851_v48  ;;  %2892 = vst [vmem:[%s4901_s9 + $0xe8] sm:$0xff] %v2802_v23 }
 0x61d   :  { %2894 = vst [vmem:[%s4901_s9 + $0xf8] sm:$0xff] %v2853_v17 }
 0x61e   :  { %v2805_v49 = vpop.f32.mrb[52].mxu0 }
 0x61f   :  { %v2806_v20 = vadd.f32 %v2805_v49, %v4730_v54  ;;  %v2856_v43 = vpop.f32.mrb[52].mxu1  ;;  %v2807_v52 = vpop.f32.mrb[53].mxu0 }
 0x620   :  { %v2857_v50 = vadd.f32 %v2856_v43, %v4730_v54  ;;  %v2808_v61 = vadd.f32 %v2807_v52, %v4730_v54  ;;  %v2858_v24 = vpop.f32.mrb[53].mxu1  ;;  %v2809_v25 = vpop.f32.mrb[54].mxu0 }
 0x621   :  { %2907 = vst [vmem:[%s4901_s9 + $0x160] sm:$0xf] %v2806_v20  ;;  %v2859_v53 = vadd.f32 %v2858_v24, %v4730_v54  ;;  %v2860_v56 = vpop.f32.mrb[54].mxu1  ;;  %v2810_v2 = vpop.f32.mrb[55].mxu0 }
 0x622   :  { %2909 = vst [vmem:[%s4901_s9 + $0x170] sm:$0xf] %v2857_v50  ;;  %2908 = vst [vmem:[%s4901_s9 + $0x168] sm:$0xf] %v2808_v61  ;;  %v2861_v57 = vpop.f32.mrb[55].mxu1 }
 0x623   :  { %2910 = vst [vmem:[%s4901_s9 + $0x178] sm:$0xf] %v2859_v53 }

</bundles_post_ra>
